<compile_context>
chip_gen: v7x
topology: tpu7x:2x2x1
jax: 0.10.0
libtpu: 0.0.40
codegen_flags: <defaults>
</compile_context>

<pallas_src>
import functools

import jax
import jax.numpy as jnp
from jax.experimental import pallas as pl
from jax.experimental.pallas import tpu as pltpu

CPAD = 128          # lane-dense channel padding
EPS = 1e-6          # GroupNorm eps (matches reference)


# ----------------------------- in-kernel helpers -----------------------------

def _group_norm(xf, gamma, beta, *, ng, c_real, swish):
    """GroupNorm(+affine)(+swish) on xf: (T, CPAD) f32 -> (T, CPAD) f32.

    Two-pass (numerically stable) statistics.  The block-diagonal
    group-averaging matrix P is built in-kernel from iota, so no (C,C)
    matrix is DMA'd from HBM per call.  Pad channels stay exactly 0.
    """
    cg = c_real // ng
    ri = jax.lax.broadcasted_iota(jnp.int32, (CPAD, CPAD), 0)
    ci = jax.lax.broadcasted_iota(jnp.int32, (CPAD, CPAD), 1)
    same_group = (ri // cg) == (ci // cg)
    valid = (ri < c_real) & (ci < c_real)
    P = jnp.where(same_group & valid, 1.0 / cg, 0.0).astype(jnp.float32)

    m1 = jnp.mean(xf, axis=0, keepdims=True)                     # (1, CPAD)
    gm = jnp.dot(m1, P, preferred_element_type=jnp.float32)      # group mean
    d = xf - gm
    v1 = jnp.mean(d * d, axis=0, keepdims=True)                  # (1, CPAD)
    gv = jnp.dot(v1, P, preferred_element_type=jnp.float32)      # group var
    inv = jax.lax.rsqrt(gv + EPS)
    y = d * inv * gamma + beta
    if swish:
        y = y * jax.nn.sigmoid(y)                                # nonlinearity()
    return y


def _conv3x3(y3, w_flat, *, H, W):
    """3x3 same conv as ONE MXU matmul with K = 9*CPAD.

    y3: (H, W, CPAD) f32, w_flat: (9*CPAD, CPAD) bf16 -> (H*W, CPAD) f32.
    Halo handling: two zero rows are concatenated above/below (untiled-axis
    concat), the image is flattened, the 9 taps are static sublane slices of
    the flat image, and wrap-around columns are zeroed with iota masks.
    """
    T = H * W
    z = jnp.zeros((2, W, CPAD), jnp.float32)
    xp = jnp.concatenate([z, y3, z], axis=0)                     # (H+4, W, CPAD)
    xf = xp.reshape((H + 4) * W, CPAD)

    col = jax.lax.broadcasted_iota(jnp.int32, (T, CPAD), 0) % W
    lmask = (col > 0).astype(jnp.float32)        # zero left-neighbour of col 0
    rmask = (col < (W - 1)).astype(jnp.float32)  # zero right-neighbour of col W-1

    taps = []
    for dy in range(3):
        for dx in range(3):
            start = (dy + 1) * W + (dx - 1)
            t = jax.lax.slice(xf, (start, 0), (start + T, CPAD))
            if dx == 0:
                t = t * lmask
            elif dx == 2:
                t = t * rmask
            taps.append(t.astype(jnp.bfloat16))
    patch = jnp.concatenate(taps, axis=1)                        # (T, 9*CPAD) bf16
    return jnp.dot(patch, w_flat, preferred_element_type=jnp.float32)


# ----------------------------- Pallas kernels -----------------------------

def _conv3x3_kernel(x_ref, w_ref, b_ref, o_ref, *, H, W):
    # plain 3x3 conv (conv_in, upsample conv)
    y = _conv3x3(x_ref[0], w_ref[...], H=H, W=W) + b_ref[...]
    o_ref[0] = y.reshape(H, W, CPAD)


def _resnet_kernel(*refs, H, W, c_in, c_out, ng_in, ng_out, has_nin):
    # Fused ResnetBlock: GN1+swish -> conv1 -> GN2+swish -> conv2 (+ shortcut).
    if has_nin:
        (x_ref, g1, be1, w1, b1, g2, be2, w2, b2, nw, nb, o_ref) = refs
    else:
        (x_ref, g1, be1, w1, b1, g2, be2, w2, b2, o_ref) = refs
    xf = x_ref[0].reshape(H * W, CPAD)
    h = _group_norm(xf, g1[...], be1[...], ng=ng_in, c_real=c_in, swish=True)
    h = _conv3x3(h.reshape(H, W, CPAD), w1[...], H=H, W=W) + b1[...]
    # temb_channels == 0 -> no temb branch; dropout(p=0) is the identity.
    h = _group_norm(h, g2[...], be2[...], ng=ng_out, c_real=c_out, swish=True)
    h = _conv3x3(h.reshape(H, W, CPAD), w2[...], H=H, W=W) + b2[...]
    if has_nin:                                   # 1x1 nin_shortcut, fused
        sc = jnp.dot(xf.astype(jnp.bfloat16), nw[...],
                     preferred_element_type=jnp.float32) + nb[...]
    else:
        sc = xf
    o_ref[0] = (sc + h).reshape(H, W, CPAD)


def _attn_kernel(x_ref, g_ref, be_ref, wqkv_ref, bqkv_ref, wp_ref, bp_ref,
                 o_ref, *, H, W, c_real, ng):
    # Fused AttnBlock: GN -> fused q/k/v 1x1 -> softmax attention -> proj -> +x.
    T = H * W
    xf = x_ref[0].reshape(T, CPAD)
    hf = _group_norm(xf, g_ref[...], be_ref[...], ng=ng, c_real=c_real,
                     swish=False)
    qkv = jnp.dot(hf.astype(jnp.bfloat16), wqkv_ref[...],
                  preferred_element_type=jnp.float32) + bqkv_ref[...]
    q = qkv[:, 0:CPAD]
    k = qkv[:, CPAD:2 * CPAD]
    v = qkv[:, 2 * CPAD:3 * CPAD]
    scale = float(c_real) ** (-0.5)               # scale uses the REAL channel count
    logits = jax.lax.dot_general(
        q.astype(jnp.bfloat16), k.astype(jnp.bfloat16),
        (((1,), (1,)), ((), ())),
        preferred_element_type=jnp.float32) * scale              # (T, T)
    m = jnp.max(logits, axis=-1, keepdims=True)
    p = jnp.exp(logits - m)
    s = jnp.sum(p, axis=-1, keepdims=True)
    p = p * pl.reciprocal(s, approx=True)         # EUP reciprocal (free slot)
    a = jnp.dot(p.astype(jnp.bfloat16), v.astype(jnp.bfloat16),
                preferred_element_type=jnp.float32)              # (T, CPAD)
    proj = jnp.dot(a.astype(jnp.bfloat16), wp_ref[...],
                   preferred_element_type=jnp.float32) + bp_ref[...]
    o_ref[0] = (xf + proj).reshape(H, W, CPAD)    # residual=True


def _gn_conv_kernel(x_ref, g_ref, be_ref, w_ref, b_ref, o_ref,
                    *, H, W, c_real, ng):
    # norm_out + nonlinearity + conv_out fused.
    xf = x_ref[0].reshape(H * W, CPAD)
    h = _group_norm(xf, g_ref[...], be_ref[...], ng=ng, c_real=c_real, swish=True)
    y = _conv3x3(h.reshape(H, W, CPAD), w_ref[...], H=H, W=W) + b_ref[...]
    o_ref[0] = y.reshape(H, W, CPAD)


# ----------------------------- pallas_call wrappers -----------------------------

def _img_spec(H, W):
    return pl.BlockSpec((1, H, W, CPAD), lambda b: (b, 0, 0, 0))


def _full_spec(shape):
    return pl.BlockSpec(shape, lambda b, _n=len(shape): (0,) * _n)


def _compiler_params():
    return pltpu.CompilerParams(
        dimension_semantics=("parallel",),            # megacore / v7x dual TC
        vmem_limit_bytes=32 * 1024 * 1024)


def _call(kernel, args, H, W, *, flops, transcendentals=0):
    N = args[0].shape[0]
    in_specs = [_img_spec(H, W)] + [_full_spec(a.shape) for a in args[1:]]
    bytes_accessed = int(2 * N * H * W * CPAD * 4
                         + sum(int(a.size) * a.dtype.itemsize for a in args[1:]))
    return pl.pallas_call(
        kernel,
        grid=(N,),
        in_specs=in_specs,
        out_specs=_img_spec(H, W),
        out_shape=jax.ShapeDtypeStruct((N, H, W, CPAD), jnp.float32),
        compiler_params=_compiler_params(),
        cost_estimate=pl.CostEstimate(flops=int(flops),
                                      transcendentals=int(transcendentals),
                                      bytes_accessed=bytes_accessed),
    )(*args)


def plain_conv(x, p):
    N, H, W, _ = x.shape
    kern = functools.partial(_conv3x3_kernel, H=H, W=W)
    flops = 2 * N * H * W * 9 * CPAD * CPAD
    return _call(kern, [x, p['w'], p['b']], H, W, flops=flops)


def resnet(x, p):
    N, H, W, _ = x.shape
    has_nin = 'nin_w' in p
    kern = functools.partial(_resnet_kernel, H=H, W=W,
                             c_in=p['c_in'], c_out=p['c_out'],
                             ng_in=p['ng_in'], ng_out=p['ng_out'],
                             has_nin=has_nin)
    args = [x, p['g1'], p['be1'], p['w1'], p['b1'],
            p['g2'], p['be2'], p['w2'], p['b2']]
    if has_nin:
        args += [p['nin_w'], p['nin_b']]
    T = H * W
    flops = 2 * N * T * 9 * CPAD * CPAD * 2 + (2 * N * T * CPAD * CPAD if has_nin else 0)
    return _call(kern, args, H, W, flops=flops, transcendentals=2 * N * T * CPAD)


def attn(x, p):
    N, H, W, _ = x.shape
    kern = functools.partial(_attn_kernel, H=H, W=W, c_real=p['c'], ng=p['ng'])
    args = [x, p['g'], p['be'], p['wqkv'], p['bqkv'], p['wp'], p['bp']]
    T = H * W
    flops = 2 * N * (T * CPAD * 3 * CPAD + 2 * T * T * CPAD + T * CPAD * CPAD)
    return _call(kern, args, H, W, flops=flops, transcendentals=N * T * T)


def gn_swish_conv(x, params):
    N, H, W, _ = x.shape
    c = params['norm_out_c']
    kern = functools.partial(_gn_conv_kernel, H=H, W=W, c_real=c,
                             ng=1 if c < 32 else 32)
    args = [x, params['norm_out_g'], params['norm_out_be'],
            params['conv_out_w'], params['conv_out_b']]
    flops = 2 * N * H * W * 9 * CPAD * CPAD
    return _call(kern, args, H, W, flops=flops,
                 transcendentals=N * H * W * CPAD)


# ----------------------------- decoder forward -----------------------------

def decoder_forward(z_nchw, params, cfg):
    nr = len(cfg['ch_mult'])
    z = jnp.transpose(z_nchw, (0, 2, 3, 1)).astype(jnp.float32)   # NCHW -> NHWC
    N, H, W, C = z.shape
    z = jnp.pad(z, ((0, 0), (0, 0), (0, 0), (0, CPAD - C)))       # lane-dense pad

    h = plain_conv(z, params['conv_in'])
    h = resnet(h, params['mid_block_1'])
    h = attn(h, params['mid_attn_1'])
    h = resnet(h, params['mid_block_2'])

    for i_level in reversed(range(nr)):
        lvl = params['up'][i_level]
        for i_block in range(cfg['num_res_blocks'] + 1):
            h = resnet(h, lvl['block'][i_block])
            if len(lvl['attn']) > 0:
                h = attn(h, lvl['attn'][i_block])
        if i_level != 0:
            # nearest-neighbour 2x upsample (pure data movement, plain JAX glue)
            h = jnp.repeat(jnp.repeat(h, 2, axis=1), 2, axis=2)
            h = plain_conv(h, lvl['upsample'])                    # resamp_with_conv

    # give_pre_end=False path
    h = gn_swish_conv(h, params)                                  # norm_out+swish+conv_out
    out = h[:, :, :, :cfg['out_ch']]                              # drop channel padding
    return jnp.transpose(out, (0, 3, 1, 2))                       # NHWC -> NCHW


# ----------------------------- deterministic params -----------------------------

def _prep_conv3x3(key, cin, cout):
    kw, kb = jax.random.split(key)
    w = 0.05 * jax.random.normal(kw, (3, 3, cin, cout), jnp.float32)
    b = 0.01 * jax.random.normal(kb, (cout,), jnp.float32)
    wp = jnp.zeros((3, 3, CPAD, CPAD), jnp.float32).at[:, :, :cin, :cout].set(w)
    bp = jnp.zeros((1, CPAD), jnp.float32).at[0, :cout].set(b)
    return {'w': wp.reshape(9 * CPAD, CPAD).astype(jnp.bfloat16), 'b': bp}


def _prep_conv1x1(key, cin, cout):
    kw, kb = jax.random.split(key)
    w = 0.05 * jax.random.normal(kw, (cin, cout), jnp.float32)
    b = 0.01 * jax.random.normal(kb, (cout,), jnp.float32)
    wp = jnp.zeros((CPAD, CPAD), jnp.float32).at[:cin, :cout].set(w)
    bp = jnp.zeros((1, CPAD), jnp.float32).at[0, :cout].set(b)
    return wp.astype(jnp.bfloat16), bp


def _prep_gn(c):
    g = jnp.zeros((1, CPAD), jnp.float32).at[0, :c].set(1.0)
    b = jnp.zeros((1, CPAD), jnp.float32)
    return g, b


def _prep_resnet(key, cin, cout):
    k1, k2, k3 = jax.random.split(key, 3)
    p = {'c_in': cin, 'c_out': cout,
         'ng_in': 1 if cin < 32 else 32, 'ng_out': 1 if cout < 32 else 32}
    p['g1'], p['be1'] = _prep_gn(cin)
    c1 = _prep_conv3x3(k1, cin, cout)
    p['w1'], p['b1'] = c1['w'], c1['b']
    p['g2'], p['be2'] = _prep_gn(cout)
    c2 = _prep_conv3x3(k2, cout, cout)
    p['w2'], p['b2'] = c2['w'], c2['b']
    if cin != cout:                                  # nin_shortcut (1x1)
        p['nin_w'], p['nin_b'] = _prep_conv1x1(k3, cin, cout)
    return p


def _prep_attn(key, c):
    kq, kk, kv, kp = jax.random.split(key, 4)
    p = {'c': c, 'ng': 1 if c < 32 else 32}
    p['g'], p['be'] = _prep_gn(c)
    wq, bq = _prep_conv1x1(kq, c, c)
    wk, bk = _prep_conv1x1(kk, c, c)
    wv, bv = _prep_conv1x1(kv, c, c)
    p['wqkv'] = jnp.concatenate([wq, wk, wv], axis=1)   # fused q/k/v weights
    p['bqkv'] = jnp.concatenate([bq, bk, bv], axis=1)
    p['wp'], p['bp'] = _prep_conv1x1(kp, c, c)
    return p


def make_decoder_params(key, cfg):
    keys = iter(jax.random.split(key, 256))
    ch, ch_mult = cfg['ch'], cfg['ch_mult']
    nr = len(ch_mult)
    block_in = ch * ch_mult[nr - 1]
    curr_res = cfg['resolution'] // 2 ** (nr - 1)

    params = {}
    params['conv_in'] = _prep_conv3x3(next(keys), cfg['z_channels'], block_in)
    params['mid_block_1'] = _prep_resnet(next(keys), block_in, block_in)
    params['mid_attn_1'] = _prep_attn(next(keys), block_in)      # use_attn=True
    params['mid_block_2'] = _prep_resnet(next(keys), block_in, block_in)

    up = [None] * nr
    for i_level in reversed(range(nr)):
        lvl = {'block': [], 'attn': []}
        block_out = ch * ch_mult[i_level]
        for _ in range(cfg['num_res_blocks'] + 1):
            lvl['block'].append(_prep_resnet(next(keys), block_in, block_out))
            block_in = block_out
            if curr_res in cfg['attn_resolutions']:
                lvl['attn'].append(_prep_attn(next(keys), block_in))
        if i_level != 0:
            lvl['upsample'] = _prep_conv3x3(next(keys), block_in, block_in)
            curr_res = curr_res * 2
        up[i_level] = lvl
    params['up'] = up

    params['norm_out_g'], params['norm_out_be'] = _prep_gn(block_in)
    params['norm_out_c'] = block_in
    cvo = _prep_conv3x3(next(keys), block_in, cfg['out_ch'])
    params['conv_out_w'], params['conv_out_b'] = cvo['w'], cvo['b']
    return params


# ----------------------------- main -----------------------------

if __name__ == "__main__":
    cfg = dict(
        ch=32, out_ch=3, ch_mult=(1, 2), num_res_blocks=1,
        attn_resolutions=(8,), dropout=0.0, resamp_with_conv=True,
        in_channels=3, resolution=16, z_channels=4, give_pre_end=False,
        use_attn=True,
    )
    key = jax.random.PRNGKey(0)
    kp, kz = jax.random.split(key)
    params = make_decoder_params(kp, cfg)

    nr = len(cfg['ch_mult'])
    zres = cfg['resolution'] // 2 ** (nr - 1)
    z = jax.random.normal(kz, (2, cfg['z_channels'], zres, zres), jnp.float32)

    out = decoder_forward(z, params, cfg)
    out = jax.block_until_ready(out)

    expected = (2, cfg['out_ch'], cfg['resolution'], cfg['resolution'])
    assert out.shape == expected, (out.shape, expected)
    assert bool(jnp.all(jnp.isfinite(out)))
    print("KERNEL_OK")
</pallas_src>

<mosaic_0001>
module attributes {stable_mosaic.version = 11 : i64} {
  func.func @_conv3x3_kernel(%arg0: i32, %arg1: memref<1x8x8x128xf32, #tpu.memory_space<vmem>>, %arg2: memref<1152x128xbf16, #tpu.memory_space<vmem>>, %arg3: memref<1x128xf32, #tpu.memory_space<vmem>>, %arg4: memref<1x8x8x128xf32, #tpu.memory_space<vmem>>) attributes {dimension_semantics = [#tpu.dimension_semantics<parallel>], iteration_bounds = array<i64: 2>, scalar_prefetch = 0 : i64, scratch_operands = 0 : i64, tpu.core_type = #tpu.core_type<tc>, window_params = [{transform_indices = @transform_0, window_bounds = array<i64: 1, 8, 8, 128>}, {pipeline_mode = #tpu.pipeline_mode<synchronous>, transform_indices = @transform_1, window_bounds = array<i64: 1152, 128>}, {pipeline_mode = #tpu.pipeline_mode<synchronous>, transform_indices = @transform_2, window_bounds = array<i64: 1, 128>}, {transform_indices = @transform_3, window_bounds = array<i64: 1, 8, 8, 128>}]} {
    %c0 = arith.constant 0 : index
    %c0_0 = arith.constant 0 : index
    %c0_1 = arith.constant 0 : index
    %c0_2 = arith.constant 0 : index
    %0 = vector.load %arg1[%c0, %c0_0, %c0_1, %c0_2] : memref<1x8x8x128xf32, #tpu.memory_space<vmem>>, vector<1x8x8x128xf32>
    %1 = vector.shape_cast %0 : vector<1x8x8x128xf32> to vector<8x8x128xf32>
    %c0_3 = arith.constant 0 : index
    %c0_4 = arith.constant 0 : index
    %2 = vector.load %arg2[%c0_3, %c0_4] : memref<1152x128xbf16, #tpu.memory_space<vmem>>, vector<1152x128xbf16>
    %cst = arith.constant 0.000000e+00 : f32
    %3 = vector.broadcast %cst : f32 to vector<2x8x128xf32>
    %4 = tpu.concatenate %3, %1, %3 in 0 : vector<2x8x128xf32>, vector<8x8x128xf32>, vector<2x8x128xf32> -> vector<12x8x128xf32>
    %5 = vector.shape_cast %4 : vector<12x8x128xf32> to vector<96x128xf32>
    %6 = tpu.iota {dimensions = array<i32: 0>} : vector<64x128xi32>
    %c8_i32 = arith.constant 8 : i32
    %c0_i32 = arith.constant 0 : i32
    %7 = arith.cmpi eq, %c8_i32, %c0_i32 : i32
    %c1_i32 = arith.constant 1 : i32
    %8 = arith.select %7, %c1_i32, %c8_i32 : i32
    %9 = vector.broadcast %8 : i32 to vector<64x128xi32>
    %10 = arith.remsi %6, %9 : vector<64x128xi32>
    %c0_i32_5 = arith.constant 0 : i32
    %11 = vector.broadcast %c0_i32_5 : i32 to vector<64x128xi32>
    %12 = arith.cmpi ne, %10, %11 : vector<64x128xi32>
    %c0_i32_6 = arith.constant 0 : i32
    %13 = vector.broadcast %c0_i32_6 : i32 to vector<64x128xi32>
    %14 = arith.cmpi slt, %10, %13 : vector<64x128xi32>
    %c0_i32_7 = arith.constant 0 : i32
    %15 = arith.cmpi slt, %8, %c0_i32_7 : i32
    %16 = vector.broadcast %15 : i1 to vector<64x128xi1>
    %17 = vector.broadcast %16 : vector<64x128xi1> to vector<64x128xi1>
    %18 = arith.xori %14, %17 : vector<64x128xi1>
    %19 = arith.andi %18, %12 : vector<64x128xi1>
    %20 = vector.broadcast %8 : i32 to vector<64x128xi32>
    %21 = arith.addi %10, %20 : vector<64x128xi32>
    %22 = arith.select %19, %21, %10 : vector<64x128xi1>, vector<64x128xi32>
    %c0_i32_8 = arith.constant 0 : i32
    %23 = vector.broadcast %c0_i32_8 : i32 to vector<64x128xi32>
    %24 = arith.cmpi sgt, %22, %23 : vector<64x128xi32>
    %25 = arith.extui %24 : vector<64x128xi1> to vector<64x128xi32>
    %26 = arith.sitofp %25 : vector<64x128xi32> to vector<64x128xf32>
    %c7_i32 = arith.constant 7 : i32
    %27 = vector.broadcast %c7_i32 : i32 to vector<64x128xi32>
    %28 = arith.cmpi slt, %22, %27 : vector<64x128xi32>
    %29 = arith.extui %28 : vector<64x128xi1> to vector<64x128xi32>
    %30 = arith.sitofp %29 : vector<64x128xi32> to vector<64x128xf32>
    %31 = vector.extract_strided_slice %5 {offsets = [7, 0], sizes = [64, 128], strides = [1, 1]} : vector<96x128xf32> to vector<64x128xf32>
    %32 = arith.mulf %31, %26 : vector<64x128xf32>
    %33 = arith.truncf %32 : vector<64x128xf32> to vector<64x128xbf16>
    %34 = vector.extract_strided_slice %5 {offsets = [8, 0], sizes = [64, 128], strides = [1, 1]} : vector<96x128xf32> to vector<64x128xf32>
    %35 = arith.truncf %34 : vector<64x128xf32> to vector<64x128xbf16>
    %36 = vector.extract_strided_slice %5 {offsets = [9, 0], sizes = [64, 128], strides = [1, 1]} : vector<96x128xf32> to vector<64x128xf32>
    %37 = arith.mulf %36, %30 : vector<64x128xf32>
    %38 = arith.truncf %37 : vector<64x128xf32> to vector<64x128xbf16>
    %39 = vector.extract_strided_slice %5 {offsets = [15, 0], sizes = [64, 128], strides = [1, 1]} : vector<96x128xf32> to vector<64x128xf32>
    %40 = arith.mulf %39, %26 : vector<64x128xf32>
    %41 = arith.truncf %40 : vector<64x128xf32> to vector<64x128xbf16>
    %42 = vector.extract_strided_slice %5 {offsets = [16, 0], sizes = [64, 128], strides = [1, 1]} : vector<96x128xf32> to vector<64x128xf32>
    %43 = arith.truncf %42 : vector<64x128xf32> to vector<64x128xbf16>
    %44 = vector.extract_strided_slice %5 {offsets = [17, 0], sizes = [64, 128], strides = [1, 1]} : vector<96x128xf32> to vector<64x128xf32>
    %45 = arith.mulf %44, %30 : vector<64x128xf32>
    %46 = arith.truncf %45 : vector<64x128xf32> to vector<64x128xbf16>
    %47 = vector.extract_strided_slice %5 {offsets = [23, 0], sizes = [64, 128], strides = [1, 1]} : vector<96x128xf32> to vector<64x128xf32>
    %48 = arith.mulf %47, %26 : vector<64x128xf32>
    %49 = arith.truncf %48 : vector<64x128xf32> to vector<64x128xbf16>
    %50 = vector.extract_strided_slice %5 {offsets = [24, 0], sizes = [64, 128], strides = [1, 1]} : vector<96x128xf32> to vector<64x128xf32>
    %51 = arith.truncf %50 : vector<64x128xf32> to vector<64x128xbf16>
    %52 = vector.extract_strided_slice %5 {offsets = [25, 0], sizes = [64, 128], strides = [1, 1]} : vector<96x128xf32> to vector<64x128xf32>
    %53 = arith.mulf %52, %30 : vector<64x128xf32>
    %54 = arith.truncf %53 : vector<64x128xf32> to vector<64x128xbf16>
    %55 = tpu.concatenate %33, %35, %38, %41, %43, %46, %49, %51, %54 in 1 : vector<64x128xbf16>, vector<64x128xbf16>, vector<64x128xbf16>, vector<64x128xbf16>, vector<64x128xbf16>, vector<64x128xbf16>, vector<64x128xbf16>, vector<64x128xbf16>, vector<64x128xbf16> -> vector<64x1152xbf16>
    %cst_9 = arith.constant dense<0.000000e+00> : vector<64x128xf32>
    %56 = tpu.matmul %55, %2, %cst_9 {dimension_numbers = #tpu.dot_dimension_numbers<[1], [0], [0], [1], [0, 0, 1, 1], [], []>} : vector<64x1152xbf16>, vector<1152x128xbf16>, vector<64x128xf32> -> vector<64x128xf32>
    %c0_10 = arith.constant 0 : index
    %c0_11 = arith.constant 0 : index
    %57 = vector.load %arg3[%c0_10, %c0_11] : memref<1x128xf32, #tpu.memory_space<vmem>>, vector<1x128xf32>
    %58 = vector.broadcast %57 : vector<1x128xf32> to vector<64x128xf32>
    %59 = arith.addf %56, %58 : vector<64x128xf32>
    %60 = vector.shape_cast %59 : vector<64x128xf32> to vector<8x8x128xf32>
    %c0_12 = arith.constant 0 : index
    %c0_13 = arith.constant 0 : index
    %c0_14 = arith.constant 0 : index
    %c0_15 = arith.constant 0 : index
    %61 = vector.load %arg4[%c0_12, %c0_13, %c0_14, %c0_15] : memref<1x8x8x128xf32, #tpu.memory_space<vmem>>, vector<1x8x8x128xf32>
    %62 = vector.shape_cast %61 : vector<1x8x8x128xf32> to vector<8x8x128xf32>
    %63 = vector.shape_cast %60 : vector<8x8x128xf32> to vector<1x8x8x128xf32>
    tpu.vector_store %arg4[%c0_12, %c0_13, %c0_14, %c0_15], %63 {strides = array<i32>} : memref<1x8x8x128xf32, #tpu.memory_space<vmem>>, vector<1x8x8x128xf32>,
    return
  }
  func.func @transform_0(%arg0: i32) -> (i32, i32, i32, i32) {
    %c0_i32 = arith.constant 0 : i32
    %c0_i32_0 = arith.constant 0 : i32
    %c0_i32_1 = arith.constant 0 : i32
    %c0_i32_2 = arith.constant 0 : i32
    return %arg0, %c0_i32, %c0_i32_0, %c0_i32_1 : i32, i32, i32, i32
  }
  func.func @transform_1(%arg0: i32) -> (i32, i32) {
    %c0_i32 = arith.constant 0 : i32
    %c0_i32_0 = arith.constant 0 : i32
    %c0_i32_1 = arith.constant 0 : i32
    return %c0_i32, %c0_i32_0 : i32, i32
  }
  func.func @transform_2(%arg0: i32) -> (i32, i32) {
    %c0_i32 = arith.constant 0 : i32
    %c0_i32_0 = arith.constant 0 : i32
    %c0_i32_1 = arith.constant 0 : i32
    return %c0_i32, %c0_i32_0 : i32, i32
  }
  func.func @transform_3(%arg0: i32) -> (i32, i32, i32, i32) {
    %c0_i32 = arith.constant 0 : i32
    %c0_i32_0 = arith.constant 0 : i32
    %c0_i32_1 = arith.constant 0 : i32
    %c0_i32_2 = arith.constant 0 : i32
    return %arg0, %c0_i32, %c0_i32_0, %c0_i32_1 : i32, i32, i32, i32
  }
}

</mosaic_0001>

<bundles_post_ra>
// kernel: tpu_custom_call.1
= control target key start
LH: loop header
LB: loop body
LE: loop exit
PB: predicated region body
PF: predicated region fallthrough
CT: control target
= control target key end

     0   :  { %8 = vsyncpa [#allocation3], 0  ;;  %s3412_s0 = inlined_call_operand.hbm [shape: f32[2,8,8,128], index: 0, kind: input, shape index: {}]   ;;  %s3413_s1 = inlined_call_operand.hbm [shape: bf16[1152,128], index: 1, kind: input, shape index: {}]   ;;  %s3414_s2 = inlined_call_operand.vmem [shape: f32[1,128], index: 2, kind: input, shape index: {}]   ;;  %s3415_s3 = inlined_call_operand.hbm [shape: f32[2,8,8,128], index: 3, kind: output, shape index: {}]  }
   0x1   :  { %10 = vsyncpa [#allocation3 + $0x1], 0 }
   0x2   :  { %11 = vsyncpa [#allocation6], 0 }
   0x3   :  { %12 = vsyncpa [#allocation4], 0 }
   0x4   :  { %14 = vsyncpa [#allocation4 + $0x1], 0  ;;  %s2690_s12 = smov 0   ;;  %s2692_s13 = smov 0  }
   0x5   :  { %s2694_s14 = smov 0   ;;  %s2696_s15 = smov 0  }
   0x6 LB: > { %s2711_s16 = sadd.s32 4294967295, %s2658_s15   ;;  %s2071_s17 = sadd.s32 4294967294, %s2658_s15   ;;  %s2658_s15 = sphi %s2696_s15, %s3445_s15   ;;  %s2654_s14 = sphi %s2694_s14, %s3444_s14   ;;  %s2650_s13 = sphi %s2692_s13, %s3443_s13   ;;  %s2646_s12 = sphi %s2690_s12, %s3442_s12  }
   0x7   : > { %p40_p0 = scmp.ne.s32.totalorder %s2650_s13, %s2646_s12  ;;  %p3416_p1 = scmp.eq.s32.totalorder %s2711_s16, 0 }
   0x8   : > { %p112_p3 = scmp.eq.s32.totalorder %s2071_s17, 1  ;;  %p2072_p5 = scmp.ge.s32.totalorder %s2658_s15, 1 }
   0x9   : > { %p2720_p4 = por %p3416_p1, %p40_p0  ;;  %p119_p7 = scmp.lt.s32.totalorder %s2658_s15, 3 }
   0xa   : > { %p2725_p6 = por %p112_p3, %p40_p0  ;;  %s2660_s21 = smov [#allocation5]  }
   0xb   : > { %s3419_s18 = scalar_select %p2720_p4, 1, 0 }
   0xc   : > { %s3420_s19 = scalar_select %p2725_p6, 1, 0 }
   0xd   : > { %p2730_p8 = pnand %p2072_p5, %p119_p7  ;;  %s131_s22 = sshll.u32 %s2660_s21, 4  ;;  %s2734_s22 = int_to_ptr.vmem [resolvable:$true] %s131_s22 }
   0xe   : > { %s2746_s24 = sadd.s32 1, %s2658_s15   ;;  %s27_s25 = sadd.s32 1, %s2654_s14 }
   0xf   : > { %s3421_s20 = scalar_select %p2730_p8, 1, 0 }
  0x10   : > { %p2398_p9 = pneg %p2730_p8  ;;  %s24_s26 = ssub.s32 %s2658_s15, %s2746_s24 }
  0x11   : > { %s2530_s29 = scalar_lea.hbm %s3413_s1, 9216 }
  0x12   : > { %p2741_p11 = pnand %p2398_p9, %p3416_p1  ;;  %p2531_p12 = scmp.ne.s32.totalorder %s3413_s1, %s2530_s29 }
  0x13   : > { %p2537_p5 = scmp.lt.u32.totalorder %s2530_s29, %s3413_s1 }
  0x14   : > { %p2532_p13 = pneg %p2741_p11 }
  0x16   : > { %p2533_p0 = pnand %p2532_p13, %p2531_p12 }
  0x18   : > { %p2534_p3 = pneg %p2533_p0 }
  0x1a   : > { %p2539_p7 = pnand %p2537_p5, %p2534_p3 }
  0x1c   : > { %2542 = shalt.err (!%p2539_p7)
}
  0x1d   : > { %s2543_s7 = scalar_lea.vmem %s2734_s22, 9216  ;;  %p2551_p2 = scmp.lt.s32.totalorder %s2734_s22, %s2734_s22 }
  0x1e   : > { %p2544_p9 = scmp.ne.s32.totalorder %s2734_s22, %s2543_s7  ;;  %p2552_p6 = scmp.lt.s32.totalorder %s2543_s7, %s2543_s7 }
  0x20   : > { %p2546_p10 = pnand %p2544_p9, %p2532_p13  ;;  %p2553_p4 = por %p2552_p6, %p2551_p2 }
  0x22   : > { %p2547_p1 = pneg %p2546_p10 }
  0x24   : > { %p2554_p8 = pnand %p2553_p4, %p2547_p1 }
  0x26   : > { %2557 = shalt.err (!%p2554_p8)
}
  0x27   : > { %s2661_s8 = smov 64   ;;  %s2662_s9 = smov 4  }
  0x28   : > { %2401 = dma.hbm_to_vmem [thread:$0]  (!%p2741_p11), %s3413_s1, 9216, %s2734_s22, [#allocation6], %s2661_s8, %s2661_s8, %s2662_s9  }
  0x29   : > { %p25_p2 = scmp.eq.s32.totalorder %s24_s26, 0  ;;  %p34_p1 = scmp.ne.s32.totalorder %s2654_s14, %s2650_s13 }
  0x2a   : > { %p35_p4 = scmp.eq.s32.totalorder %s2658_s15, 0  ;;  %p2411_p6 = scmp.lt.s32.totalorder %s2658_s15, 2 }
  0x2b   : > { %s2777_s17 = scalar_select %p25_p2, %s2654_s14, %s27_s25  }
  0x2c   : > { %p36_p8 = por %p35_p4, %p34_p1  ;;  %p3423_p10 = scmp.eq.s32.totalorder %s2711_s16, 1 }
  0x2d   : > { %s148_s27 = sand.u32 1, %s2654_s14   ;;  %s2176_s28 = sshll.u32 %s2658_s15, 10 }
  0x2e   : > { %p2781_p12 = por %p3423_p10, %p34_p1  ;;  %s2075_s29 = sshll.u32 %s148_s27, 6 }
  0x2f   : > { %s2790_s4 = scalar_lea.hbm %s3412_s0, %s2176_s28  ;;  %s152_s22 = scalar_lea.vmem [#allocation2], %s2075_s29 }
  0x30   : > { %s159_s25 = sshll.u32 %s152_s22, 4  ;;  %p2792_p11 = pnand %p2411_p6, %p36_p8  ;;  %s2796_s25 = int_to_ptr.vmem [resolvable:$true] %s159_s25 }
  0x31   : > { %s2798_s5 = scalar_lea.sflag [#allocation3], %s148_s27  ;;  %s2558_s6 = scalar_lea.hbm %s2790_s4, 1024 }
  0x32   : > { %p2559_p13 = scmp.ne.s32.totalorder %s2790_s4, %s2558_s6  ;;  %p2560_p0 = pneg %p2792_p11 }
  0x33   : > { %s2563_s9 = scalar_lea.hbm %s3412_s0, 2048  ;;  %p2564_p7 = scmp.lt.u32.totalorder %s2790_s4, %s3412_s0 }
  0x34   : > { %p2561_p3 = pnand %p2560_p0, %p2559_p13  ;;  %p2565_p9 = scmp.lt.u32.totalorder %s2563_s9, %s2558_s6 }
  0x35   : > { %p2567_p1 = scmp.lt.u32.totalorder %s2558_s6, %s2790_s4 }
  0x36   : > { %p2562_p5 = pneg %p2561_p3  ;;  %p2566_p2 = por %p2565_p9, %p2564_p7 }
  0x38   : > { %p2568_p4 = por %p2567_p1, %p2566_p2 }
  0x3a   : > { %p2569_p6 = pnand %p2568_p4, %p2562_p5 }
  0x3c   : > { %2572 = shalt.err (!%p2569_p6)
}
  0x3d   : > { %s2573_s27 = scalar_lea.vmem %s2796_s25, 1024  ;;  %s2663_s28 = smov [#allocation2]  }
  0x3e   : > { %p2574_p8 = scmp.ne.s32.totalorder %s2796_s25, %s2573_s27  ;;  %s2578_s29 = sshll.u32 %s2663_s28, 4  ;;  %s2579_s29 = int_to_ptr.vmem [resolvable:$false] %s2578_s29 }
  0x3f   : > { %s2580_s23 = scalar_lea.vmem %s2579_s29, 2048  ;;  %p2581_p3 = scmp.lt.s32.totalorder %s2796_s25, %s2579_s29 }
  0x40   : > { %p2576_p10 = pnand %p2574_p8, %p2560_p0  ;;  %p2582_p7 = scmp.lt.s32.totalorder %s2580_s23, %s2573_s27 }
  0x42   : > { %p2577_p13 = pneg %p2576_p10  ;;  %p2583_p9 = por %p2582_p7, %p2581_p3 }
  0x44   : > { %p2584_p2 = pnand %p2583_p9, %p2577_p13 }
  0x46   : > { %2587 = shalt.err (!%p2584_p2)
}
  0x47   : > { %s2664_s30 = smov 128   ;;  %s2665_s22 = smov 8  }
  0x48   : > { %2405 = dma.hbm_to_vmem [thread:$0]  (!%p2792_p11), %s2790_s4, 1024, %s2796_s25, %s2798_s5, %s2664_s30, %s2664_s30, %s2665_s22  }
  0x49   : > { %p3426_p0 = scmp.ne.s32.totalorder %s3421_s20, 0 }
  0x4a   : > { %s2829_s6 = sand.u32 (!%p3426_p0), 1, %s2650_s13   ;;  %p3427_p5 = scmp.ne.s32.totalorder (!%p3426_p0), %s3419_s18, 0 }
  0x4b   : > { %171 = sbr.rel (%p3426_p0) target bundleno = 452 (0x1c4), region = 32  ;;  %s2079_s7 = sshll.u32 (!%p3426_p0), %s2829_s6, 6 }
  0x4c   : > { %s174_s8 = scalar_lea.sflag (!%p3426_p0), [#allocation3], %s2829_s6  ;;  %s2835_s9 = scalar_lea.vmem (!%p3426_p0), [#allocation2], %s2079_s7 }
  0x52   : > { %2633 = dma.done.wait (%p3427_p5), %s174_s8, 1024  }
  0x53   : > { %2635 = vsyncadd (%p3427_p5), %s174_s8, 4294966272  ;;  %p3428_p11 = scmp.eq.s32.totalorder %s2711_s16, 0 }
  0x55   : > { %2637 = dma.done.wait (%p3428_p11), [#allocation6], 9216   ;;  %p3429_p1 = pmov %p3428_p11 }
  0x56   : > { %v357_v0 = vlaneseq  ;;  %v2454_v12 = vld [vmem:[#allocation5 + $0x40] sm:$0xff]   ;;  %v2666_v13 = vmov 0.0   ;;  %v2458_v18 = vld [vmem:[#allocation5 + $0x48] sm:$0xff]   ;;  %vm518_vm4 = vcmask 1046528   ;;  %v2462_v25 = vld [vmem:[#allocation5 + $0x50] sm:$0xff]   ;;  %vm569_vm9 = vcmask 1040384  }
  0x57   : > { %2639 = vsyncadd (%p3429_p1), [#allocation6], 4294958080  ;;  %v2455_v15 = vld [vmem:[#allocation5 + $0xc0] sm:$0xff]   ;;  %2178 = vmatprep.subr.bf16.mxu0 %v2454_v12  ;;  %v2459_v20 = vld [vmem:[#allocation5 + $0xc8] sm:$0xff]   ;;  %vm666_vm10 = vsmask.f32 3328 }
  0x58   : > { %v2845_v1 = vshrl.u32 %v357_v0, 7  ;;  %v2456_v16 = vld [vmem:[#allocation5] sm:$0xff]   ;;  %2218 = vmatprep.subr.bf16.mxu1 %v2455_v15  ;;  %v2460_v22 = vld [vmem:[#allocation5 + $0x8] sm:$0xff]   ;;  %v2463_v27 = vld [vmem:[#allocation5 + $0xd0] sm:$0xff]   ;;  %vm794_vm11 = vsmask.f32 4352 }
  0x59   : > { %v2457_v17 = vld [vmem:[#allocation5 + $0x80] sm:$0xff]   ;;  %2179 = vmatpush3.bf16.msra.mxu0 %v2456_v16  ;;  %v2461_v24 = vld [vmem:[#allocation5 + $0x88] sm:$0xff]   ;;  %v2464_v29 = vld [vmem:[#allocation5 + $0x10] sm:$0xff]   ;;  %vm707_vm13 = vcmask 1042432   ;;  %s203_s4 = scalar_lea.vmem [#allocation7], %s2079_s7  ;;  %s2177_s26 = sshll.u32 %s2711_s16, 10 }
  0x5a   : > { %v359_v2 = vadd.s32 8, %v2845_v1  ;;  %v360_v3 = vadd.s32 16, %v2845_v1  ;;  %v361_v4 = vadd.s32 24, %v2845_v1  ;;  %v370_v5 = vand.u32 7, %v2845_v1  ;;  %2219 = vmatpush3.bf16.msra.mxu1 %v2457_v17  ;;  %2180 = vmatprep.subr.bf16.mxu0 %v2458_v18  ;;  %v2465_v31 = vld [vmem:[#allocation5 + $0x90] sm:$0xff]   ;;  %v2466_v33 = vld [vmem:[#allocation5 + $0x58] sm:$0xff]   ;;  %s3368_s10 = scalar_lea.hbm %s3415_s3, %s2177_s26 }
  0x5b   : > { %v2852_v6 = vadd.s32 32, %v2845_v1  ;;  %v2855_v7 = vadd.s32 40, %v2845_v1  ;;  %v2858_v8 = vadd.s32 48, %v2845_v1  ;;  %2220 = vmatprep.subr.bf16.mxu1 %v2459_v20  ;;  %v2467_v35 = vld [vmem:[#allocation5 + $0xd8] sm:$0xff]   ;;  %v2470_v42 = vld [vmem:[#allocation5 + $0x60] sm:$0xff]   ;;  %v2474_v50 = vld [vmem:[#allocation5 + $0x68] sm:$0xff]  }
  0x5c   : > { %v377_v9 = vand.u32 7, %v359_v2  ;;  %v384_v10 = vand.u32 7, %v360_v3  ;;  %v391_v11 = vand.u32 7, %v361_v4  ;;  %vm462_vm0 = vcmp.gt.s32.totalorder %v370_v5, 0  ;;  %v2468_v37 = vld [vmem:[#allocation5 + $0x18] sm:$0xff]   ;;  %v2471_v44 = vld [vmem:[#allocation5 + $0xe0] sm:$0xff]  }
  0x5d   : > { %v2082_v14 = vsel %vm462_vm0, 1.0, %v2666_v13  ;;  %vm486_vm5 = vcmp.lt.s32.totalorder %v370_v5, 7  ;;  %2181 = vmatpush3.bf16.msra.mxu0 %v2460_v22  ;;  %v2469_v39 = vld [vmem:[#allocation5 + $0x98] sm:$0xff]   ;;  %v2472_v46 = vld [vmem:[#allocation5 + $0x20] sm:$0xff]   ;;  %v2475_v53 = vld [vmem:[#allocation5 + $0xe8] sm:$0xff]   ;;  %v412_v26 = vand.u32 7, %v2858_v8 }
  0x5e   : > { %vm463_vm1 = vcmp.gt.s32.totalorder %v377_v9, 0  ;;  %vm464_vm2 = vcmp.gt.s32.totalorder %v384_v10, 0  ;;  %vm465_vm3 = vcmp.gt.s32.totalorder %v391_v11, 0  ;;  %vm2870_vm6 = vcmp.lt.s32.totalorder %v377_v9, 7  ;;  %2221 = vmatpush3.bf16.msra.mxu1 %v2461_v24  ;;  %2182 = vmatprep.subr.bf16.mxu0 %v2462_v25  ;;  %v2473_v48 = vld [vmem:[#allocation5 + $0xa0] sm:$0xff]   ;;  %v2476_v55 = vld [vmem:[#allocation5 + $0x28] sm:$0xff]  }
  0x5f   : > { %v2862_v19 = vsel %vm463_vm1, 1.0, %v2666_v13  ;;  %v2865_v21 = vsel %vm464_vm2, 1.0, %v2666_v13  ;;  %v2868_v23 = vsel %vm465_vm3, 1.0, %v2666_v13  ;;  %vm2874_vm7 = vcmp.lt.s32.totalorder %v384_v10, 7  ;;  %2222 = vmatprep.subr.bf16.mxu1 %v2463_v27  ;;  %v2477_v57 = vld [vmem:[#allocation5 + $0xa8] sm:$0xff]   ;;  %v2478_v59 = vld [vmem:[#allocation5 + $0x70] sm:$0xff]  }
  0x60   : > { %vm2878_vm8 = vcmp.lt.s32.totalorder %v391_v11, 7  ;;  %v2090_v32 = vsel %vm486_vm5, 1.0, %v2666_v13  ;;  %v2883_v34 = vrot.slane %v2082_v14, 1  ;;  %v520_v36 = vrot.slane %v2862_v19, 1  ;;  %v2479_v61 = vld [vmem:[#allocation5 + $0xf0] sm:$0xff]   ;;  %v2482_v4 = vld [vmem:[#allocation5 + $0x78] sm:$0xff]  }
  0x61   : > { %2183 = vmatpush3.bf16.msra.mxu0 %v2464_v29  ;;  %v522_v38 = vrot.slane %v2865_v21, 1  ;;  %v524_v41 = vrot.slane %v2868_v23, 1  ;;  %v2895_v45 = vrot.slane %v2090_v32, 7  ;;  %v2091_v49 = vsel %vm2870_vm6, 1.0, %v2666_v13  ;;  %v2480_v63 = vld [vmem:[#allocation5 + $0x30] sm:$0xff]   ;;  %v2483_v9 = vld [vmem:[#allocation5 + $0xf8] sm:$0xff]  }
  0x62   : > { %2223 = vmatpush3.bf16.msra.mxu1 %v2465_v31  ;;  %2184 = vmatprep.subr.bf16.mxu0 %v2466_v33  ;;  %v2889_v40 = vsel %vm518_vm4, %v2883_v34, %v520_v36  ;;  %v2893_v43 = vmul.f32 0.0, %v2883_v34  ;;  %v2092_v52 = vsel %vm2874_vm7, 1.0, %v2666_v13  ;;  %v2908_v54 = vsel %vm2878_vm8, 1.0, %v2666_v13  ;;  %v2481_v2 = vld [vmem:[#allocation5 + $0xb0] sm:$0xff]   ;;  %v2484_v10 = vld [vmem:[#allocation5 + $0x38] sm:$0xff]   ;;  %v2935_v20 = vld [vmem:[%s2835_s9] sm:$0xff] }
  0x63   : > { %2224 = vmatprep.subr.bf16.mxu1 %v2467_v35  ;;  %v544_v47 = vmul.f32 0.0, %v2889_v40  ;;  %v571_v0 = vrot.slane %v2091_v49, 7  ;;  %v573_v3 = vrot.slane %v2092_v52, 7  ;;  %v575_v5 = vrot.slane %v2908_v54, 7  ;;  %v2485_v15 = vld [vmem:[#allocation5 + $0xb8] sm:$0xff]   ;;  %v2941_v21 = vld [vmem:[%s2835_s9 + $0x10] sm:$0xff] }
  0x64   : > { %v523_v11 = vsel %vm518_vm4, %v520_v36, %v522_v38  ;;  %v525_v12 = vsel %vm518_vm4, %v522_v38, %v524_v41  ;;  %v2920_v14 = vadd.s32 56, %v2845_v1  ;;  %v2932_v19 = vmul.f32 0.0, %v2895_v45  ;;  %v2938_v1 = vld [vmem:[%s2835_s9 + $0x8] sm:$0xff]  ;;  %v2956_v29 = vld [vmem:[%s2835_s9 + $0x18] sm:$0xff]  ;;  %s1988_s25 = sshll.u32 %s203_s4, 4  ;;  %s1975_s11 = scalar_lea.sflag [#allocation4], %s2829_s6  ;;  %s3362_s25 = int_to_ptr.vmem [resolvable:$true] %s1988_s25 }
  0x65   : > { %2185 = vmatpush3.bf16.msra.mxu0 %v2468_v37  ;;  %v552_v51 = vpack.c.bf16 %v544_v47, %v2893_v43  ;;  %v2926_v17 = vsel %vm569_vm9, %v2895_v45, %v571_v0  ;;  %v2929_v18 = vsel %vm569_vm9, %v571_v0, %v573_v3  ;;  %v2946_v22 = vsel %vm569_vm9, %v573_v3, %v575_v5  ;;  %v2486_v37 = vld [vmem:[#allocation5 + $0x140] sm:$0xff]   ;;  %s2588_s27 = scalar_lea.vmem %s3362_s25, 1024  ;;  %s2667_s28 = smov [#allocation7]  }
  0x66   : > { %2225 = vmatpush3.bf16.msra.mxu1 %v2469_v39  ;;  %2186 = vmatprep.subr.bf16.mxu0 %v2470_v42  ;;  %v398_v24 = vand.u32 7, %v2852_v6  ;;  %v405_v25 = vand.u32 7, %v2855_v7  ;;  %v557_v27 = vpack.c.bf16 %v2935_v20, %v2666_v13  ;;  %v558_v28 = vpack.c.bf16 %v2941_v21, %v2938_v1  ;;  %p2589_p4 = scmp.ne.s32.totalorder %s3362_s25, %s2588_s27  ;;  %s2592_s29 = sshll.u32 %s2667_s28, 4  ;;  %s2593_s29 = int_to_ptr.vmem [resolvable:$false] %s2592_s29 }
  0x67   : > { %2226 = vmatprep.subr.bf16.mxu1 %v2471_v44  ;;  %v796_v56 = vshrl.u32 %v552_v51, 16  ;;  %v799_v58 = vshll.u32 %v552_v51, 16  ;;  %v608_v30 = vmul.f32 %v2889_v40, %v2935_v20  ;;  %v609_v31 = vmul.f32 %v523_v11, %v2938_v1  ;;  %s2594_s23 = scalar_lea.vmem %s2593_s29, 2048  ;;  %p2595_p10 = scmp.lt.s32.totalorder %s3362_s25, %s2593_s29 }
  0x68   : > { %v610_v32 = vmul.f32 %v525_v12, %v2941_v21  ;;  %v2964_v33 = vmul.f32 %v2889_v40, %v2938_v1  ;;  %v2967_v35 = vmul.f32 %v523_v11, %v2941_v21  ;;  %v2970_v36 = vmul.f32 %v525_v12, %v2956_v29  ;;  %p2590_p6 = pnand %p2589_p4, %p2781_p12  ;;  %p2596_p13 = scmp.lt.s32.totalorder %s2594_s23, %s2588_s27 }
  0x69   : > { %2187 = vmatpush3.bf16.msra.mxu0 %v2472_v46  ;;  %v2910_v60 = vrot.slane %v796_v56, 3  ;;  %v2912_v62 = vrot.slane %v799_v58, 4  ;;  %v668_v38 = vshrl.u32 %v557_v27, 16  ;;  %v671_v39 = vshll.u32 %v557_v27, 16  ;;  %v2487_v46 = vld [vmem:[#allocation5 + $0x1c0] sm:$0xff]  }
  0x6a   : > { %2227 = vmatpush3.bf16.msra.mxu1 %v2473_v48  ;;  %2188 = vmatprep.subr.bf16.mxu0 %v2474_v50  ;;  %v676_v42 = vshrl.u32 %v558_v28, 16  ;;  %v679_v44 = vshll.u32 %v558_v28, 16  ;;  %vm2974_vm12 = vcmp.gt.s32.totalorder %v398_v24, 0  ;;  %v616_v40 = vpack.c.bf16 %v608_v30, %v2893_v43  ;;  %p2591_p8 = pneg %p2590_p6  ;;  %p2597_p3 = por %p2596_p13, %p2595_p10 }
  0x6b   : > { %2228 = vmatprep.subr.bf16.mxu1 %v2475_v53  ;;  %v802_v16 = vor.u32 %v2912_v62, %v2910_v60  ;;  %v617_v48 = vpack.c.bf16 %v610_v32, %v609_v31  ;;  %v545_v49 = vmul.f32 %v523_v11, %v2935_v20  ;;  %v546_v50 = vmul.f32 %v525_v12, %v2938_v1 }
  0x6c   : > { %v670_v51 = vrot.slane %v668_v38, 4  ;;  %v673_v52 = vrot.slane %v671_v39, 5  ;;  %v678_v53 = vrot.slane %v676_v42, 4  ;;  %v847_v56 = vshrl.u32 %v616_v40, 16  ;;  %p2598_p7 = pnand %p2597_p3, %p2591_p8 }
  0x6d   : > { %2189 = vmatpush3.bf16.msra.mxu0 %v2476_v55  ;;  %v681_v55 = vrot.slane %v679_v44, 5  ;;  %v855_v58 = vshrl.u32 %v617_v48, 16  ;;  %v553_v0 = vpack.c.bf16 %v546_v50, %v545_v49  ;;  %v595_v43 = vmul.f32 %v2926_v17, %v2935_v20 }
  0x6e   : > { %2229 = vmatpush3.bf16.msra.mxu1 %v2477_v57  ;;  %2190 = vmatprep.subr.bf16.mxu0 %v2478_v59  ;;  %v850_v57 = vshll.u32 %v616_v40, 16  ;;  %v858_v59 = vshll.u32 %v617_v48, 16  ;;  %v596_v40 = vmul.f32 %v2929_v18, %v2938_v1  ;;  %v2994_v48 = vld [vmem:[%s2835_s9 + $0x20] sm:$0xff]  ;;  %vm3001_vm14 = vcmp.lt.s32.totalorder %v398_v24, 7 }
  0x6f   : > { %2230 = vmatprep.subr.bf16.mxu1 %v2479_v61  ;;  %v674_v61 = vor.u32 %v673_v52, %v670_v51  ;;  %v807_v39 = vshll.u32 %v553_v0, 16  ;;  %v597_v51 = vmul.f32 %v2946_v22, %v2941_v21  ;;  %v603_v52 = vpack.c.bf16 %v595_v43, %v2932_v19 }
  0x70   : > { %v852_v3 = vrot.slane %v850_v57, 4  ;;  %v559_v57 = vpack.c.bf16 %v2994_v48, %v2956_v29  ;;  %vm467_vm15 = vcmp.gt.s32.totalorder %v405_v25, 0  ;;  %vm491_vm0 = vcmp.lt.s32.totalorder %v405_v25, 7  ;;  %v2498_v25 = vld [vmem:[#allocation5 + $0x158] sm:$0xff]  }
  0x71   : > { %2191 = vmatpush3.bf16.msra.mxu0 %v2480_v63  ;;  %v2981_v63 = vor.u32 %v681_v55, %v678_v53  ;;  %v813_v11 = vshrl.u32 %v674_v61, 16  ;;  %v816_v12 = vshll.u32 %v674_v61, 16  ;;  %v809_v50 = vrot.slane %v807_v39, 4  ;;  %v2488_v53 = vld [vmem:[#allocation5 + $0x100] sm:$0xff]  }
  0x72   : > { %2231 = vmatpush3.bf16.msra.mxu1 %v2481_v2  ;;  %2192 = vmatprep.subr.bf16.mxu0 %v2482_v4  ;;  %v849_v2 = vrot.slane %v847_v56, 3  ;;  %v857_v4 = vrot.slane %v855_v58, 3  ;;  %v2086_v58 = vsel %vm2974_vm12, 1.0, %v2666_v13  ;;  %v708_v6 = vrot.slane %v603_v52, 5  ;;  %v2496_v52 = vld [vmem:[#allocation5 + $0x110] sm:$0xff]  }
  0x73   : > { %2232 = vmatprep.subr.bf16.mxu1 %v2483_v9  ;;  %v860_v9 = vrot.slane %v858_v59, 4  ;;  %v815_v32 = vrot.slane %v813_v11, 3  ;;  %v604_v59 = vpack.c.bf16 %v597_v51, %v596_v40  ;;  %v3017_v24 = vsel %vm467_vm15, 1.0, %v2666_v13  ;;  %v2492_v11 = vld [vmem:[#allocation5 + $0x108] sm:$0xff]  }
  0x74   : > { %v853_v30 = vor.u32 %v852_v3, %v849_v2  ;;  %v685_v43 = vshrl.u32 %v559_v57, 16  ;;  %v688_v2 = vshll.u32 %v559_v57, 16  ;;  %v526_v3 = vrot.slane %v2086_v58, 1 }
  0x75   : > { %2193 = vmatpush3.bf16.msra.mxu0 %v2484_v10  ;;  %v683_v10 = vsel %vm666_vm10, %v674_v61, %v2981_v63  ;;  %v2987_v31 = vor.u32 %v860_v9, %v857_v4  ;;  %v3026_v4 = vrot.slane %v604_v59, 5  ;;  %v830_v9 = vshrl.u32 %v708_v6, 16 }
  0x76   : > { %2233 = vmatpush3.bf16.msra.mxu1 %v2485_v15  ;;  %2258 = vmatprep.subr.bf16.mxu0 %v2486_v37  ;;  %v804_v15 = vshrl.u32 %v553_v0, 16  ;;  %v821_v27 = vshrl.u32 %v683_v10, 16  ;;  %v824_v28 = vshll.u32 %v683_v10, 16  ;;  %v818_v37 = vrot.slane %v816_v12, 4  ;;  %v2490_v0 = vld [vmem:[#allocation5 + $0x148] sm:$0xff]  }
  0x77   : > { %2298 = vmatprep.subr.bf16.mxu1 %v2487_v46  ;;  %v862_v46 = vsel %vm794_vm11, %v853_v30, %v2987_v31  ;;  %v833_v10 = vshll.u32 %v708_v6, 16  ;;  %v687_v12 = vrot.slane %v685_v43, 4  ;;  %v710_v60 = vsel %vm707_vm13, %v708_v6, %v3026_v4  ;;  %v3057_v6 = vld [vmem:[%s2835_s9 + $0x28] sm:$0xff] }
  0x78   : > { %v806_v38 = vrot.slane %v804_v15, 3  ;;  %v823_v42 = vrot.slane %v821_v27, 3  ;;  %v826_v44 = vrot.slane %v824_v28, 4  ;;  %v819_v49 = vor.u32 %v818_v37, %v815_v32  ;;  %1738 = vmatprep.mubr.bf16.mxu1 %v862_v46  ;;  %v2491_v43 = vld [vmem:[#allocation5 + $0x1c8] sm:$0xff]  }
  0x79   : > { %v690_v15 = vrot.slane %v688_v2, 5  ;;  %v3031_v27 = vsel %vm518_vm4, %v524_v41, %v526_v3  ;;  %v528_v28 = vrot.slane %v3017_v24, 1  ;;  %v832_v62 = vrot.slane %v830_v9, 3  ;;  %v2494_v41 = vld [vmem:[#allocation5 + $0x150] sm:$0xff]  }
  0x7a   : > { %v3005_v56 = vor.u32 %v826_v44, %v823_v42  ;;  %v3014_v19 = vor.u32 %v809_v50, %v806_v38  ;;  %v611_v30 = vmul.f32 %v3031_v27, %v2956_v29  ;;  %v838_v32 = vshrl.u32 %v710_v60, 16  ;;  %v2489_v50 = vld [vmem:[#allocation5 + $0x180] sm:$0xff]  }
  0x7b   : > { %v841_v37 = vshll.u32 %v710_v60, 16  ;;  %v3038_v38 = vor.u32 %v690_v15, %v687_v12  ;;  %v3043_v23 = vsel %vm518_vm4, %v526_v3, %v528_v28  ;;  %v547_v44 = vmul.f32 %v3031_v27, %v2941_v21  ;;  %v2493_v15 = vld [vmem:[#allocation5 + $0x188] sm:$0xff]  }
  0x7c   : > { %v828_v61 = vsel %vm794_vm11, %v819_v49, %v3005_v56  ;;  %v811_v47 = vsel %vm794_vm11, %v802_v16, %v3014_v19  ;;  %v835_v16 = vrot.slane %v833_v10, 4  ;;  %v612_v42 = vmul.f32 %v3043_v23, %v2994_v48 }
  0x7d   : > { %1673 = vmatprep.mubr.bf16.mxu0 %v828_v61  ;;  %v548_v46 = vmul.f32 %v3043_v23, %v2956_v29  ;;  %v840_v40 = vrot.slane %v838_v32, 3  ;;  %v843_v49 = vrot.slane %v841_v37, 4  ;;  %v692_v51 = vsel %vm666_vm10, %v2981_v63, %v3038_v38  ;;  %v3060_v61 = vld [vmem:[%s2835_s9 + $0x30] sm:$0xff] }
  0x7e   : > { %1674 = vmatmul.mubr.bf16.vlgmr.msra.gmra.mrb[0].mxu0 %v811_v47  ;;  %v836_v39 = vor.u32 %v835_v16, %v832_v62  ;;  %v926_v57 = vshll.u32 %v692_v51, 16  ;;  %v618_v58 = vpack.c.bf16 %v612_v42, %v611_v30  ;;  %v2094_v2 = vsel %vm3001_vm14, 1.0, %v2666_v13  ;;  %v2500_v42 = vld [vmem:[#allocation5 + $0x118] sm:$0xff]  }
  0x7f   : > { %2259 = vmatpush3.bf16.msra.mxu0 %v2488_v53  ;;  %v923_v53 = vshrl.u32 %v692_v51, 16  ;;  %v554_v59 = vpack.c.bf16 %v548_v46, %v547_v44  ;;  %v3068_v7 = vsel %vm491_vm0, 1.0, %v2666_v13  ;;  %v560_v3 = vpack.c.bf16 %v3060_v61, %v3057_v6 }
  0x80   : > { %2260 = vmatprep.subr.bf16.mxu0 %v2490_v0  ;;  %v3062_v0 = vor.u32 %v843_v49, %v840_v40  ;;  %v928_v9 = vrot.slane %v926_v57, 4  ;;  %v968_v10 = vshrl.u32 %v618_v58, 16  ;;  %v577_v55 = vrot.slane %v2094_v2, 7  ;;  %v2502_v49 = vld [vmem:[#allocation5 + $0x160] sm:$0xff]   ;;  %v2497_v57 = vld [vmem:[#allocation5 + $0x190] sm:$0xff]  }
  0x81   : > { %v925_v47 = vrot.slane %v923_v53, 3  ;;  %v949_v60 = vshrl.u32 %v554_v59, 16  ;;  %v952_v62 = vshll.u32 %v554_v59, 16  ;;  %v579_v37 = vrot.slane %v3068_v7, 7  ;;  %v2504_v2 = vld [vmem:[#allocation5 + $0x120] sm:$0xff]  }
  0x82   : > { %v845_v12 = vsel %vm794_vm11, %v836_v39, %v3062_v0  ;;  %v970_v30 = vrot.slane %v968_v10, 3  ;;  %v3080_v39 = vsel %vm569_vm9, %v575_v5, %v577_v55  ;;  %v694_v40 = vshrl.u32 %v560_v3, 16 }
  0x83   : > { %2261 = vmatpush3.bf16.msra.mxu0 %v2492_v11  ;;  %v971_v11 = vshll.u32 %v618_v58, 16  ;;  %1739 = vmatmul.mubr.bf16.vlgmr.msra.gmra.mrb[0].mxu1 %v845_v12  ;;  %v3074_v16 = vor.u32 %v928_v9, %v925_v47  ;;  %v951_v44 = vrot.slane %v949_v60, 3  ;;  %v954_v46 = vrot.slane %v952_v62, 4  ;;  %v2508_v60 = vld [vmem:[#allocation5 + $0x128] sm:$0xff]  }
  0x84   : > { %2262 = vmatprep.subr.bf16.mxu0 %v2494_v41  ;;  %v2495_v41 = vld [vmem:[#allocation5 + $0x1d0] sm:$0xff]   ;;  %2299 = vmatpush3.bf16.msra.mxu1 %v2489_v50  ;;  %v3090_v50 = vsel %vm569_vm9, %v577_v55, %v579_v37  ;;  %v598_v54 = vmul.f32 %v3080_v39, %v2956_v29  ;;  %v696_v58 = vrot.slane %v694_v40, 4  ;;  %v697_v59 = vshll.u32 %v560_v3, 16 }
  0x85   : > { %v973_v32 = vrot.slane %v971_v11, 4  ;;  %2300 = vmatprep.subr.bf16.mxu1 %v2491_v43  ;;  %v957_v51 = vsel %vm794_vm11, %v3005_v56, %v3074_v16  ;;  %v3094_v5 = vor.u32 %v954_v46, %v951_v44  ;;  %v419_v43 = vand.u32 7, %v2920_v14  ;;  %v2499_v14 = vld [vmem:[#allocation5 + $0x1d8] sm:$0xff]  }
  0x86   : > { %1681 = vmatprep.mubr.bf16.mxu0 %v957_v51  ;;  %vm468_vm1 = vcmp.gt.s32.totalorder %v412_v26, 0  ;;  %vm492_vm2 = vcmp.lt.s32.totalorder %v412_v26, 7  ;;  %v699_v47 = vrot.slane %v697_v59, 5  ;;  %v2506_v26 = vld [vmem:[#allocation5 + $0x168] sm:$0xff]   ;;  %v2501_v11 = vld [vmem:[#allocation5 + $0x198] sm:$0xff]  }
  0x87   : > { %2263 = vmatpush3.bf16.msra.mxu0 %v2496_v52  ;;  %v3085_v53 = vor.u32 %v973_v32, %v970_v30  ;;  %v599_v52 = vmul.f32 %v3090_v50, %v2994_v48  ;;  %vm469_vm3 = vcmp.gt.s32.totalorder %v419_v43, 0  ;;  %vm493_vm5 = vcmp.lt.s32.totalorder %v419_v43, 7 }
  0x88   : > { %2264 = vmatprep.subr.bf16.mxu0 %v2498_v25  ;;  %2301 = vmatpush3.bf16.msra.mxu1 %v2493_v15  ;;  %v956_v25 = vsel %vm794_vm11, %v3014_v19, %v3094_v5  ;;  %v2096_v8 = vsel %vm492_vm2, 1.0, %v2666_v13  ;;  %v3113_v12 = vor.u32 %v699_v47, %v696_v58  ;;  %v2089_v19 = vsel %vm469_vm3, 1.0, %v2666_v13 }
  0x89   : > { %v975_v56 = vsel %vm794_vm11, %v2987_v31, %v3085_v53  ;;  %v605_v3 = vpack.c.bf16 %v599_v52, %v598_v54  ;;  %v2088_v31 = vsel %vm468_vm1, 1.0, %v2666_v13  ;;  %1682 = vmatmul.mubr.bf16.gmra.mrb[4].mxu0 %v956_v25  ;;  %2302 = vmatprep.subr.bf16.mxu1 %v2495_v41  ;;  %v2097_v15 = vsel %vm493_vm5, 1.0, %v2666_v13  ;;  %v2503_v41 = vld [vmem:[#allocation5 + $0x1e0] sm:$0xff]   ;;  %v2512_v25 = vld [vmem:[#allocation5 + $0x130] sm:$0xff]  }
  0x8a   : > { %1746 = vmatprep.mubr.bf16.mxu1 %v975_v56  ;;  %v530_v9 = vrot.slane %v2088_v31, 1  ;;  %v3122_v55 = vrot.slane %v2089_v19, 1  ;;  %v581_v30 = vrot.slane %v2096_v8, 7  ;;  %v3124_v32 = vrot.slane %v2097_v15, 7  ;;  %v2507_v31 = vld [vmem:[#allocation5 + $0x1e8] sm:$0xff]   ;;  %v2514_v19 = vld [vmem:[#allocation5 + $0x178] sm:$0xff]  }
  0x8b   : > { %2265 = vmatpush3.bf16.msra.mxu0 %v2500_v42  ;;  %v3111_v10 = vrot.slane %v605_v3, 5  ;;  %v2510_v42 = vld [vmem:[#allocation5 + $0x170] sm:$0xff]   ;;  %v701_v24 = vsel %vm666_vm10, %v3038_v38, %v3113_v12 }
  0x8c   : > { %2266 = vmatprep.subr.bf16.mxu0 %v2502_v49  ;;  %v3120_v62 = vsel %vm518_vm4, %v528_v28, %v530_v9  ;;  %2303 = vmatpush3.bf16.msra.mxu1 %v2497_v57  ;;  %v1004_v51 = vshrl.u32 %v701_v24, 16  ;;  %v1007_v54 = vshll.u32 %v701_v24, 16  ;;  %v3143_v38 = vsel %vm569_vm9, %v579_v37, %v581_v30 }
  0x8d   : > { %v712_v44 = vsel %vm707_vm13, %v3026_v4, %v3111_v10  ;;  %v613_v28 = vmul.f32 %v3120_v62, %v3057_v6  ;;  %v549_v46 = vmul.f32 %v3120_v62, %v2994_v48  ;;  %2304 = vmatprep.subr.bf16.mxu1 %v2499_v14  ;;  %v3138_v4 = vsel %vm518_vm4, %v530_v9, %v3122_v55 }
  0x8e   : > { %v959_v40 = vshrl.u32 %v712_v44, 16  ;;  %v962_v49 = vshll.u32 %v712_v44, 16  ;;  %v3147_v52 = vsel %vm569_vm9, %v581_v30, %v3124_v32  ;;  %v1103_v57 = vshrl.u32 %v3113_v12, 16 }
  0x8f   : > { %2267 = vmatpush3.bf16.msra.mxu0 %v2504_v2  ;;  %v1006_v56 = vrot.slane %v1004_v51, 3  ;;  %v1009_v43 = vrot.slane %v1007_v54, 4  ;;  %v2505_v2 = vld [vmem:[#allocation5 + $0x1a0] sm:$0xff]   ;;  %v614_v7 = vmul.f32 %v3138_v4, %v3060_v61  ;;  %v550_v37 = vmul.f32 %v3138_v4, %v3057_v6 }
  0x90   : > { %2268 = vmatprep.subr.bf16.mxu0 %v2506_v26  ;;  %v961_v58 = vrot.slane %v959_v40, 3  ;;  %v964_v59 = vrot.slane %v962_v49, 4  ;;  %2305 = vmatpush3.bf16.msra.mxu1 %v2501_v11  ;;  %v600_v3 = vmul.f32 %v3143_v38, %v3057_v6  ;;  %v601_v47 = vmul.f32 %v3147_v52, %v3060_v61  ;;  %v3164_v11 = vld [vmem:[%s2835_s9 + $0x38] sm:$0xff] }
  0x91   : > { %v3160_v9 = vor.u32 %v1009_v43, %v1006_v56  ;;  %2306 = vmatprep.subr.bf16.mxu1 %v2503_v41  ;;  %v1105_v8 = vrot.slane %v1103_v57, 3  ;;  %v1106_v26 = vshll.u32 %v3113_v12, 16  ;;  %v619_v15 = vpack.c.bf16 %v614_v7, %v613_v28  ;;  %v2516_v28 = vld [vmem:[#allocation5 + $0x138] sm:$0xff]  }
  0x92   : > { %v3158_v14 = vor.u32 %v964_v59, %v961_v58  ;;  %v606_v30 = vpack.c.bf16 %v601_v47, %v600_v3  ;;  %v615_v44 = vmul.f32 %v3122_v55, %v3164_v11  ;;  %v2511_v3 = vld [vmem:[#allocation5 + $0x1f0] sm:$0xff]   ;;  %v3181_v47 = vld [vmem:[#allocation5 + $0x200] sm:$0xff]  }
  0x93   : > { %2269 = vmatpush3.bf16.msra.mxu0 %v2508_v60  ;;  %v555_v60 = vpack.c.bf16 %v550_v37, %v549_v46  ;;  %v3174_v41 = vsel %vm794_vm11, %v3074_v16, %v3160_v9  ;;  %v1108_v40 = vrot.slane %v1106_v26, 4  ;;  %v1040_v46 = vshrl.u32 %v619_v15, 16 }
  0x94   : > { %2270 = vmatprep.subr.bf16.mxu0 %v2510_v42  ;;  %v966_v24 = vsel %vm794_vm11, %v3062_v0, %v3158_v14  ;;  %v551_v42 = vmul.f32 %v3122_v55, %v3060_v61  ;;  %1689 = vmatprep.mubr.bf16.mxu0 %v3174_v41  ;;  %v1043_v49 = vshll.u32 %v619_v15, 16  ;;  %v3179_v57 = vrot.slane %v606_v30, 5  ;;  %v2509_v0 = vld [vmem:[#allocation5 + $0x1a8] sm:$0xff]  }
  0x95   : > { %1747 = vmatmul.mubr.bf16.gmra.mrb[4].mxu1 %v966_v24  ;;  %v1022_v51 = vshrl.u32 %v555_v60, 16  ;;  %v1025_v54 = vshll.u32 %v555_v60, 16  ;;  %v1109_v58 = vor.u32 %v1108_v40, %v1105_v8  ;;  %v620_v59 = vpack.c.bf16 %v615_v44, %v615_v44 }
  0x96   : > { %2307 = vmatpush3.bf16.msra.mxu1 %v2505_v2  ;;  %v556_v56 = vpack.c.bf16 %v551_v42, %v551_v42  ;;  %v1042_v43 = vrot.slane %v1040_v46, 3  ;;  %v1045_v7 = vrot.slane %v1043_v49, 4  ;;  %v714_v26 = vsel %vm707_vm13, %v3111_v10, %v3179_v57  ;;  %v2513_v46 = vld [vmem:[#allocation5 + $0x1b0] sm:$0xff]   ;;  %v2515_v49 = vld [vmem:[#allocation5 + $0x1f8] sm:$0xff]  }
  0x97   : > { %2271 = vmatpush3.bf16.msra.mxu0 %v2512_v25  ;;  %v1024_v37 = vrot.slane %v1022_v51, 3  ;;  %v1027_v25 = vrot.slane %v1025_v54, 4  ;;  %2308 = vmatprep.subr.bf16.mxu1 %v2507_v31  ;;  %v1110_v2 = vsel %vm794_vm11, %v3160_v9, %v1109_v58  ;;  %v1121_v15 = vshrl.u32 %v620_v59, 16 }
  0x98   : > { %2272 = vmatprep.subr.bf16.mxu0 %v2514_v19  ;;  %v1124_v8 = vshll.u32 %v620_v59, 16  ;;  %v1046_v60 = vor.u32 %v1045_v7, %v1042_v43  ;;  %v1031_v30 = vshrl.u32 %v714_v26, 16  ;;  %v1034_v44 = vshll.u32 %v714_v26, 16  ;;  %v2517_v26 = vld [vmem:[#allocation5 + $0x1b8] sm:$0xff]  }
  0x99   : > { %v1028_v19 = vor.u32 %v1027_v25, %v1024_v37  ;;  %v1123_v31 = vrot.slane %v1121_v15, 3  ;;  %v1094_v40 = vshrl.u32 %v556_v56, 16  ;;  %v1097_v42 = vshll.u32 %v556_v56, 16 }
  0x9a   : > { %2309 = vmatpush3.bf16.msra.mxu1 %v2509_v0  ;;  %v1126_v24 = vrot.slane %v1124_v8, 4  ;;  %v1047_v10 = vsel %vm794_vm11, %v3085_v53, %v1046_v60  ;;  %v1036_v54 = vrot.slane %v1034_v44, 4  ;;  %v602_v43 = vmul.f32 %v3124_v32, %v3164_v11 }
  0x9b   : > { %2273 = vmatpush3.bf16.msra.mxu0 %v2516_v28  ;;  %v1029_v51 = vsel %vm794_vm11, %v3094_v5, %v1028_v19  ;;  %v1033_v28 = vrot.slane %v1031_v30, 3  ;;  %2310 = vmatprep.subr.bf16.mxu1 %v2511_v3  ;;  %v1096_v59 = vrot.slane %v1094_v40, 3  ;;  %v1099_v0 = vrot.slane %v1097_v42, 4 }
  0x9c   : > { %2350 = vmatprep.subr.bf16.mxu0 %v3181_v47  ;;  %1754 = vmatprep.mubr.bf16.mxu1 %v1047_v10  ;;  %v1127_v58 = vor.u32 %v1126_v24, %v1123_v31  ;;  %v625_v7 = vmul.f32 %v2895_v45, %v2935_v20  ;;  %v626_v53 = vmul.f32 %v2926_v17, %v2938_v1  ;;  %v915_v30 = vshrl.u32 %v2981_v63, 16 }
  0x9d   : > { %1690 = vmatmul.mubr.bf16.gmra.mrb[8].mxu0 %v1029_v51  ;;  %v1037_v56 = vor.u32 %v1036_v54, %v1033_v28  ;;  %v627_v5 = vmul.f32 %v2929_v18, %v2941_v21  ;;  %v1100_v25 = vor.u32 %v1099_v0, %v1096_v59  ;;  %v607_v3 = vpack.c.bf16 %v602_v43, %v602_v43 }
  0x9e   : > { %1697 = vmatprep.mubr.bf16.mxu0 %v1110_v2  ;;  %v1128_v37 = vsel %vm794_vm11, %v1046_v60, %v1127_v58  ;;  %2311 = vmatpush3.bf16.msra.mxu1 %v2513_v46  ;;  %v628_v15 = vmul.f32 %v2946_v22, %v2956_v29  ;;  %v634_v8 = vpack.c.bf16 %v626_v53, %v625_v7  ;;  %v918_v44 = vshll.u32 %v2981_v63, 16 }
  0x9f   : > { %v1038_v2 = vsel %vm794_vm11, %v3158_v14, %v1037_v56  ;;  %2312 = vmatprep.subr.bf16.mxu1 %v2515_v49  ;;  %v1101_v31 = vsel %vm794_vm11, %v1028_v19, %v1100_v25  ;;  %v715_v60 = vrot.slane %v607_v3, 5  ;;  %v621_v40 = vpack.c.bf16 %v2938_v1, %v2935_v20 }
  0xa0   : > { %1755 = vmatmul.mubr.bf16.gmra.mrb[8].mxu1 %v1038_v2  ;;  %v635_v24 = vpack.c.bf16 %v628_v15, %v627_v5  ;;  %v757_v42 = vrot.slane %v634_v8, 5  ;;  %v917_v46 = vrot.slane %v915_v30, 3  ;;  %v920_v10 = vrot.slane %v918_v44, 4 }
  0xa1   : > { %1762 = vmatprep.mubr.bf16.mxu1 %v1128_v37  ;;  %v622_v14 = vpack.c.bf16 %v2956_v29, %v2941_v21  ;;  %v716_v49 = vsel %vm707_vm13, %v3179_v57, %v715_v60  ;;  %v718_v51 = vshrl.u32 %v621_v40, 16  ;;  %v721_v19 = vshll.u32 %v621_v40, 16 }
  0xa2   : > { %2313 = vmatpush3.bf16.msra.mxu1 %v2517_v26  ;;  %v3215_v63 = vrot.slane %v635_v24, 5  ;;  %v1112_v28 = vshrl.u32 %v716_v49, 16  ;;  %v1115_v54 = vshll.u32 %v716_v49, 16  ;;  %v881_v58 = vshrl.u32 %v757_v42, 16 }
  0xa3   : > { %v884_v59 = vshll.u32 %v757_v42, 16  ;;  %2374 = vmatprep.subr.bf16.mxu1 %v3181_v47  ;;  %v921_v0 = vor.u32 %v920_v10, %v917_v46  ;;  %v720_v21 = vrot.slane %v718_v51, 4  ;;  %v723_v29 = vrot.slane %v721_v19, 5 }
  0xa4   : > { %v759_v1 = vsel %vm707_vm13, %v757_v42, %v3215_v63  ;;  %v1114_v43 = vrot.slane %v1112_v28, 3  ;;  %v1117_v57 = vrot.slane %v1115_v54, 4  ;;  %v883_v7 = vrot.slane %v881_v58, 3 }
  0xa5   : > { %1698 = vmatmul.mubr.bf16.gmra.mrb[12].mxu0 %v1101_v31  ;;  %v886_v53 = vrot.slane %v884_v59, 4  ;;  %v889_v5 = vshrl.u32 %v759_v1, 16  ;;  %v892_v37 = vshll.u32 %v759_v1, 16  ;;  %v930_v25 = vsel %vm794_vm11, %v921_v0, %v3074_v16 }
  0xa6   : > { %v724_v3 = vor.u32 %v723_v29, %v720_v21  ;;  %v1118_v26 = vor.u32 %v1117_v57, %v1114_v43  ;;  %v726_v2 = vshrl.u32 %v622_v14, 16  ;;  %v729_v8 = vshll.u32 %v622_v14, 16 }
  0xa7   : > { %v887_v15 = vor.u32 %v886_v53, %v883_v7  ;;  %v891_v30 = vrot.slane %v889_v5, 3  ;;  %v894_v44 = vrot.slane %v892_v37, 4  ;;  %v639_v46 = vmul.f32 %v2883_v34, %v2935_v20 }
  0xa8   : > { %v864_v31 = vshrl.u32 %v724_v3, 16  ;;  %v867_v60 = vshll.u32 %v724_v3, 16  ;;  %v1119_v24 = vsel %vm794_vm11, %v1037_v56, %v1118_v26  ;;  %v728_v40 = vrot.slane %v726_v2, 4 }
  0xa9   : > { %v731_v42 = vrot.slane %v729_v8, 5  ;;  %1763 = vmatmul.mubr.bf16.gmra.mrb[12].mxu1 %v1119_v24  ;;  %v3225_v10 = vor.u32 %v894_v44, %v891_v30  ;;  %v649_v51 = vpack.c.bf16 %v2970_v36, %v2967_v35  ;;  %v648_v19 = vpack.c.bf16 %v2964_v33, %v639_v46  ;;  %v2519_v44 = vld [vmem:[#allocation5 + $0x208] sm:$0xff]  }
  0xaa   : > { %v866_v16 = vrot.slane %v864_v31, 3  ;;  %v869_v49 = vrot.slane %v867_v60, 4  ;;  %1868 = vmatprep.mubr.bf16.mxu1 %v930_v25  ;;  %v629_v56 = vmul.f32 %v3080_v39, %v2994_v48  ;;  %v630_v28 = vmul.f32 %v3090_v50, %v3057_v6 }
  0xab   : > { %v732_v14 = vor.u32 %v731_v42, %v728_v40  ;;  %v896_v34 = vsel %vm794_vm11, %v887_v15, %v3225_v10  ;;  %v906_v54 = vshrl.u32 %v649_v51, 16  ;;  %v909_v58 = vshll.u32 %v649_v51, 16 }
  0xac   : > { %v870_v20 = vor.u32 %v869_v49, %v866_v16  ;;  %1803 = vmatprep.mubr.bf16.mxu0 %v896_v34  ;;  %v898_v35 = vshrl.u32 %v648_v19, 16  ;;  %v901_v36 = vshll.u32 %v648_v19, 16  ;;  %v636_v1 = vpack.c.bf16 %v630_v28, %v629_v56 }
  0xad   : > { %v733_v59 = vsel %vm666_vm10, %v724_v3, %v732_v14  ;;  %v908_v21 = vrot.slane %v906_v54, 3  ;;  %v911_v29 = vrot.slane %v909_v58, 4  ;;  %v623_v53 = vpack.c.bf16 %v3057_v6, %v2994_v48  ;;  %v2520_v54 = vld [vmem:[#allocation5 + $0x210] sm:$0xff]  }
  0xae   : > { %v872_v0 = vshrl.u32 %v733_v59, 16  ;;  %v875_v33 = vshll.u32 %v733_v59, 16  ;;  %v900_v43 = vrot.slane %v898_v35, 3  ;;  %v903_v57 = vrot.slane %v901_v36, 4 }
  0xaf   : > { %v3237_v7 = vrot.slane %v636_v1, 5  ;;  %v3241_v25 = vor.u32 %v911_v29, %v908_v21  ;;  %v643_v3 = vmul.f32 %v3031_v27, %v2994_v48  ;;  %v735_v2 = vshrl.u32 %v623_v53, 16 }
  0xb0   : > { %v874_v5 = vrot.slane %v872_v0, 3  ;;  %v877_v37 = vrot.slane %v875_v33, 4  ;;  %v904_v26 = vor.u32 %v903_v57, %v900_v43  ;;  %v738_v8 = vshll.u32 %v623_v53, 16 }
  0xb1   : > { %v761_v15 = vsel %vm707_vm13, %v3215_v63, %v3237_v7  ;;  %v644_v24 = vmul.f32 %v3043_v23, %v3057_v6  ;;  %v737_v42 = vrot.slane %v735_v2, 4  ;;  %v631_v27 = vmul.f32 %v3143_v38, %v3060_v61 }
  0xb2   : > { %v3248_v30 = vor.u32 %v877_v37, %v874_v5  ;;  %v986_v31 = vshrl.u32 %v761_v15, 16  ;;  %v989_v60 = vshll.u32 %v761_v15, 16  ;;  %v913_v40 = vsel %vm794_vm11, %v904_v26, %v3241_v25 }
  0xb3   : > { %v740_v48 = vrot.slane %v738_v8, 5  ;;  %1869 = vmatmul.mubr.bf16.vlgmr.msra.gmra.mrb[16].mxu1 %v913_v40  ;;  %v650_v49 = vpack.c.bf16 %v644_v24, %v643_v3  ;;  %v632_v23 = vmul.f32 %v3147_v52, %v3164_v11  ;;  %v653_v19 = vpack.c.bf16 %v2666_v13, %v3164_v11 }
  0xb4   : > { %v879_v63 = vsel %vm794_vm11, %v870_v20, %v3248_v30  ;;  %v988_v46 = vrot.slane %v986_v31, 3  ;;  %v991_v16 = vrot.slane %v989_v60, 4  ;;  %2382 = vmatpush3.bf16.msra.mxu1 %v3181_v47  ;;  %v3266_v56 = vmul.f32 0.0, %v3124_v32  ;;  %1876 = vmatprep.mubr.bf16.mxu1 %v3174_v41 }
  0xb5   : > { %1804 = vmatmul.mubr.bf16.vlgmr.msra.gmra.mrb[16].mxu0 %v879_v63  ;;  %v3259_v51 = vor.u32 %v740_v48, %v737_v42  ;;  %2375 = vmatprep.subr.bf16.mxu1 %v2519_v44  ;;  %v995_v34 = vshrl.u32 %v650_v49, 16  ;;  %v998_v20 = vshll.u32 %v650_v49, 16  ;;  %v624_v58 = vpack.c.bf16 %v3164_v11, %v3060_v61 }
  0xb6   : > { %2351 = vmatpush3.bf16.msra.mxu0 %v3181_v47  ;;  %v3269_v28 = vor.u32 %v991_v16, %v988_v46  ;;  %v637_v59 = vpack.c.bf16 %v632_v23, %v631_v27  ;;  %v767_v32 = vshrl.u32 %v653_v19, 16  ;;  %v770_v35 = vshll.u32 %v653_v19, 16  ;;  %v2522_v27 = vld [vmem:[#allocation5 + $0x220] sm:$0xff]  }
  0xb7   : > { %2352 = vmatprep.subr.bf16.mxu0 %v2519_v44  ;;  %v742_v13 = vsel %vm666_vm10, %v732_v14, %v3259_v51  ;;  %v997_v0 = vrot.slane %v995_v34, 3  ;;  %v1000_v33 = vrot.slane %v998_v20, 4  ;;  %v744_v57 = vshrl.u32 %v624_v58, 16 }
  0xb8   : > { %v993_v47 = vsel %vm794_vm11, %v3225_v10, %v3269_v28  ;;  %v977_v36 = vshrl.u32 %v742_v13, 16  ;;  %v980_v1 = vshll.u32 %v742_v13, 16  ;;  %2383 = vmatpush3.bf16.msra.mxu1 %v2519_v44  ;;  %v3279_v21 = vrot.slane %v637_v59, 5  ;;  %v2521_v10 = vld [vmem:[#allocation5 + $0x218] sm:$0xff]  }
  0xb9   : > { %1811 = vmatprep.mubr.bf16.mxu0 %v993_v47  ;;  %v769_v29 = vrot.slane %v767_v32, 4  ;;  %v772_v41 = vrot.slane %v770_v35, 5  ;;  %2376 = vmatprep.subr.bf16.mxu1 %v2520_v54  ;;  %v747_v53 = vshll.u32 %v624_v58, 16  ;;  %v3281_v5 = vor.u32 %v1000_v33, %v997_v0  ;;  %v2523_v47 = vld [vmem:[#allocation5 + $0x228] sm:$0xff]  }
  0xba   : > { %2353 = vmatpush3.bf16.msra.mxu0 %v2519_v44  ;;  %v979_v43 = vrot.slane %v977_v36, 3  ;;  %v982_v14 = vrot.slane %v980_v1, 4  ;;  %v763_v37 = vsel %vm707_vm13, %v3237_v7, %v3279_v21  ;;  %v645_v26 = vmul.f32 %v3120_v62, %v3060_v61 }
  0xbb   : > { %2354 = vmatprep.subr.bf16.mxu0 %v2520_v54  ;;  %v773_v3 = vor.u32 %v772_v41, %v769_v29  ;;  %v1058_v2 = vshrl.u32 %v763_v37, 16  ;;  %v1061_v8 = vshll.u32 %v763_v37, 16  ;;  %v746_v44 = vrot.slane %v744_v57, 4 }
  0xbc   : > { %v3288_v15 = vor.u32 %v982_v14, %v979_v43  ;;  %v1002_v31 = vsel %vm794_vm11, %v3241_v25, %v3281_v5  ;;  %2384 = vmatpush3.bf16.msra.mxu1 %v2520_v54  ;;  %v749_v24 = vrot.slane %v747_v53, 5  ;;  %v646_v7 = vmul.f32 %v3138_v4, %v3164_v11 }
  0xbd   : > { %v774_v60 = vsel %vm666_vm10, %v3113_v12, %v773_v3  ;;  %1877 = vmatmul.mubr.bf16.gmra.mrb[20].mxu1 %v1002_v31  ;;  %v1060_v40 = vrot.slane %v1058_v2, 3  ;;  %v1063_v42 = vrot.slane %v1061_v8, 4  ;;  %v638_v12 = vpack.c.bf16 %v3266_v56, %v3266_v56  ;;  %2377 = vmatprep.subr.bf16.mxu1 %v2521_v10 }
  0xbe   : > { %v984_v62 = vsel %vm794_vm11, %v3248_v30, %v3288_v15  ;;  %2355 = vmatpush3.bf16.msra.mxu0 %v2520_v54  ;;  %v1076_v48 = vshrl.u32 %v774_v60, 16  ;;  %v1079_v25 = vshll.u32 %v774_v60, 16  ;;  %v750_v63 = vor.u32 %v749_v24, %v746_v44  ;;  %v2526_v24 = vld [vmem:[%s2835_s9 + $0x8] sm:$0xff] }
  0xbf   : > { %1812 = vmatmul.mubr.bf16.gmra.mrb[20].mxu0 %v984_v62  ;;  %2356 = vmatprep.subr.bf16.mxu0 %v2521_v10  ;;  %v651_v46 = vpack.c.bf16 %v646_v7, %v645_v26  ;;  %v3302_v4 = vor.u32 %v1063_v42, %v1060_v40  ;;  %v1157_v49 = vshrl.u32 %v773_v3, 16  ;;  %v1160_v30 = vshll.u32 %v773_v3, 16  ;;  %v2524_v26 = vld [vmem:[#allocation5 + $0x230] sm:$0xff]   ;;  %v2525_v62 = vld [vmem:[#allocation5 + $0x238] sm:$0xff]  }
  0xc0   : > { %v1078_v16 = vrot.slane %v1076_v48, 3  ;;  %2385 = vmatpush3.bf16.msra.mxu1 %v2521_v10  ;;  %v1081_v23 = vrot.slane %v1079_v25, 4  ;;  %v751_v19 = vsel %vm666_vm10, %v3259_v51, %v750_v63  ;;  %v3309_v13 = vrot.slane %v638_v12, 5  ;;  %v2527_v40 = vld [vmem:[%s2835_s9 + $0x10] sm:$0xff]  ;;  %v2528_v42 = vld [vmem:[%s2835_s9 + $0x18] sm:$0xff] }
  0xc1   : > { %v1067_v34 = vshrl.u32 %v651_v46, 16  ;;  %v1070_v20 = vshll.u32 %v651_v46, 16  ;;  %v1065_v54 = vsel %vm794_vm11, %v3269_v28, %v3302_v4  ;;  %v1049_v58 = vshrl.u32 %v751_v19, 16  ;;  %2378 = vmatprep.subr.bf16.mxu1 %v2522_v27 }
  0xc2   : > { %2357 = vmatpush3.bf16.msra.mxu0 %v2521_v10  ;;  %v1052_v56 = vshll.u32 %v751_v19, 16  ;;  %1819 = vmatprep.mubr.bf16.mxu0 %v1065_v54  ;;  %v1082_v59 = vor.u32 %v1081_v23, %v1078_v16  ;;  %v1159_v36 = vrot.slane %v1157_v49, 3  ;;  %v765_v0 = vsel %vm707_vm13, %v3279_v21, %v3309_v13 }
  0xc3   : > { %v1069_v32 = vrot.slane %v1067_v34, 3  ;;  %v1072_v35 = vrot.slane %v1070_v20, 4  ;;  %2358 = vmatprep.subr.bf16.mxu0 %v2522_v27  ;;  %v1051_v51 = vrot.slane %v1049_v58, 3  ;;  %v1162_v33 = vrot.slane %v1160_v30, 4 }
  0xc4   : > { %v1054_v1 = vrot.slane %v1052_v56, 4  ;;  %v1083_v28 = vsel %vm794_vm11, %v3160_v9, %v1082_v59  ;;  %2386 = vmatpush3.bf16.msra.mxu1 %v2522_v27  ;;  %v1139_v41 = vshrl.u32 %v765_v0, 16  ;;  %v1142_v43 = vshll.u32 %v765_v0, 16 }
  0xc5   : > { %v3316_v29 = vor.u32 %v1072_v35, %v1069_v32  ;;  %1884 = vmatprep.mubr.bf16.mxu1 %v1083_v28  ;;  %v1163_v57 = vor.u32 %v1162_v33, %v1159_v36  ;;  %v1130_v53 = vshrl.u32 %v750_v63, 16  ;;  %v1133_v10 = vshll.u32 %v750_v63, 16  ;;  %2379 = vmatprep.subr.bf16.mxu1 %v2523_v47 }
  0xc6   : > { %v1055_v14 = vor.u32 %v1054_v1, %v1051_v51  ;;  %2359 = vmatpush3.bf16.msra.mxu0 %v2522_v27  ;;  %v1141_v21 = vrot.slane %v1139_v41, 3  ;;  %v1144_v9 = vrot.slane %v1142_v43, 4  ;;  %v647_v3 = vmul.f32 0.0, %v3122_v55 }
  0xc7   : > { %v1074_v37 = vsel %vm794_vm11, %v3281_v5, %v3316_v29  ;;  %2360 = vmatprep.subr.bf16.mxu0 %v2523_v47  ;;  %v1164_v8 = vsel %vm794_vm11, %v1082_v59, %v1163_v57  ;;  %v1132_v44 = vrot.slane %v1130_v53, 3  ;;  %v1135_v31 = vrot.slane %v1133_v10, 4 }
  0xc8   : > { %v1056_v2 = vsel %vm794_vm11, %v3288_v15, %v1055_v14  ;;  %1885 = vmatmul.mubr.bf16.gmra.mrb[24].mxu1 %v1074_v37  ;;  %v1145_v5 = vor.u32 %v1144_v9, %v1141_v21  ;;  %v652_v60 = vpack.c.bf16 %v647_v3, %v647_v3  ;;  %v654_v7 = vmul.f32 %v2526_v24, %v2895_v45  ;;  %v2529_v45 = vld [vmem:[%s2835_s9 + $0x20] sm:$0xff] }
  0xc9   : > { %1820 = vmatmul.mubr.bf16.gmra.mrb[24].mxu0 %v1056_v2  ;;  %2387 = vmatpush3.bf16.msra.mxu1 %v2523_v47  ;;  %v1136_v55 = vor.u32 %v1135_v31, %v1132_v44  ;;  %v655_v15 = vmul.f32 %v2527_v40, %v2926_v17  ;;  %v656_v48 = vmul.f32 %v2528_v42, %v2929_v18  ;;  %v661_v27 = vmul.f32 0.0, %v3147_v52 }
  0xca   : > { %2361 = vmatpush3.bf16.msra.mxu0 %v2523_v47  ;;  %1892 = vmatprep.mubr.bf16.mxu1 %v1164_v8  ;;  %v1146_v25 = vsel %vm794_vm11, %v3302_v4, %v1145_v5  ;;  %v1148_v63 = vshrl.u32 %v652_v60, 16  ;;  %v1151_v46 = vshll.u32 %v652_v60, 16  ;;  %v657_v12 = vmul.f32 %v2529_v45, %v2946_v22 }
  0xcb   : > { %2362 = vmatprep.subr.bf16.mxu0 %v2524_v26  ;;  %2380 = vmatprep.subr.bf16.mxu1 %v2524_v26  ;;  %v662_v16 = vpack.c.bf16 %v655_v15, %v654_v7  ;;  %v658_v17 = vmul.f32 %v3080_v39, %v3057_v6  ;;  %v659_v18 = vmul.f32 %v3090_v50, %v3060_v61  ;;  %v2098_v15 = vld [vmem:[%s3414_s2] ss:$0 sm:$0xff] }
  0xcc   : > { %1827 = vmatprep.mubr.bf16.mxu0 %v1146_v25  ;;  %v1150_v49 = vrot.slane %v1148_v63, 3  ;;  %v1153_v52 = vrot.slane %v1151_v46, 4  ;;  %v663_v30 = vpack.c.bf16 %v657_v12, %v656_v48  ;;  %v660_v4 = vmul.f32 %v3143_v38, %v3164_v11 }
  0xcd   : > { %2388 = vmatpush3.bf16.msra.mxu1 %v2524_v26  ;;  %v1137_v23 = vsel %vm794_vm11, %v1055_v14, %v1136_v55  ;;  %v779_v22 = vrot.slane %v662_v16, 5  ;;  %v664_v19 = vpack.c.bf16 %v659_v18, %v658_v17 }
  0xce   : > { %2363 = vmatpush3.bf16.msra.mxu0 %v2524_v26  ;;  %2381 = vmatprep.subr.bf16.mxu1 %v2525_v62  ;;  %v1154_v34 = vor.u32 %v1153_v52, %v1150_v49  ;;  %v780_v20 = vrot.slane %v663_v30, 5  ;;  %v665_v6 = vpack.c.bf16 %v661_v27, %v660_v4 }
  0xcf   : > { %2364 = vmatprep.subr.bf16.mxu0 %v2525_v62  ;;  %v932_v39 = vshrl.u32 %v779_v22, 16  ;;  %v935_v54 = vshll.u32 %v779_v22, 16  ;;  %v782_v61 = vrot.slane %v664_v19, 5 }
  0xd0   : > { %v1155_v50 = vsel %vm794_vm11, %v3316_v29, %v1154_v34  ;;  %v781_v38 = vsel %vm707_vm13, %v779_v22, %v780_v20  ;;  %v784_v11 = vrot.slane %v665_v6, 5 }
  0xd1   : > { %1828 = vmatmul.mubr.bf16.gmra.mrb[28].mxu0 %v1137_v23  ;;  %2389 = vmatpush3.bf16.msra.mxu1 %v2525_v62  ;;  %v934_v58 = vrot.slane %v932_v39, 3  ;;  %v937_v56 = vrot.slane %v935_v54, 4  ;;  %v940_v59 = vshrl.u32 %v781_v38, 16  ;;  %v943_v32 = vshll.u32 %v781_v38, 16 }
  0xd2   : > { %1893 = vmatmul.mubr.bf16.gmra.mrb[28].mxu1 %v1155_v50  ;;  %2365 = vmatpush3.bf16.msra.mxu0 %v2525_v62  ;;  %v783_v35 = vsel %vm707_vm13, %v780_v20, %v782_v61  ;;  %v785_v47 = vsel %vm707_vm13, %v782_v61, %v784_v11  ;;  %v786_v36 = vsel %vm707_vm13, %v784_v11, %v3309_v13 }
  0xd3   : > { %v938_v51 = vor.u32 %v937_v56, %v934_v58  ;;  %v942_v1 = vrot.slane %v940_v59, 3  ;;  %v945_v0 = vrot.slane %v943_v32, 4  ;;  %v1013_v33 = vshrl.u32 %v783_v35, 16 }
  0xd4   : > { %v1016_v28 = vshll.u32 %v783_v35, 16  ;;  %v1085_v29 = vshrl.u32 %v785_v47, 16  ;;  %v1088_v41 = vshll.u32 %v785_v47, 16  ;;  %v1166_v43 = vshrl.u32 %v786_v36, 16 }
  0xd5   : > { %v946_v14 = vor.u32 %v945_v0, %v942_v1  ;;  %v1015_v57 = vrot.slane %v1013_v33, 3  ;;  %v1169_v53 = vshll.u32 %v786_v36, 16 }
  0xd6   : > { %v1018_v10 = vrot.slane %v1016_v28, 4  ;;  %v1087_v37 = vrot.slane %v1085_v29, 3  ;;  %v1090_v21 = vrot.slane %v1088_v41, 4  ;;  %v1168_v9 = vrot.slane %v1166_v43, 3 }
  0xd7   : > { %v947_v3 = vsel %vm794_vm11, %v938_v51, %v946_v14  ;;  %v1171_v26 = vrot.slane %v1169_v53, 4 }
  0xd8   : > { %2366 = vmatprep.mubr.bf16.mxu0 %v947_v3  ;;  %v1019_v13 = vor.u32 %v1018_v10, %v1015_v57  ;;  %v1091_v2 = vor.u32 %v1090_v21, %v1087_v37 }
  0xd9   : > { %v1172_v8 = vor.u32 %v1171_v26, %v1168_v9 }
  0xda   : > { %v1092_v44 = vsel %vm794_vm11, %v1019_v13, %v1091_v2  ;;  %v1020_v31 = vsel %vm794_vm11, %v946_v14, %v1019_v13 }
  0xdb   : > { %2370 = vmatprep.mubr.bf16.mxu1 %v1092_v44  ;;  %2367 = vmatmul.mubr.bf16.vlgmr.msra.gmra.mrb[32].mxu0 %v1020_v31  ;;  %v1173_v5 = vsel %vm794_vm11, %v1091_v2, %v1172_v8 }
  0xdc   : > { %2371 = vmatmul.mubr.bf16.vlgmr.msra.gmra.mrb[32].mxu1 %v1173_v5 }
 0x151   : > { %v2194_v60 = vpop.f32.mrb[0].mxu0 }
 0x152   : > { %v2195_v24 = vpop.f32.mrb[1].mxu0 }
 0x153   : > { %v2196_v7 = vadd.f32 %v2195_v24, %v2194_v60  ;;  %v2197_v55 = vpop.f32.mrb[2].mxu0 }
 0x154   : > { %v2198_v62 = vpop.f32.mrb[3].mxu0 }
 0x155   : > { %v2199_v40 = vadd.f32 %v2198_v62, %v2197_v55  ;;  %v1676_v48 = vadd.f32 %v2196_v7, %v2098_v15 }
 0x156   : > { %v2234_v42 = vpop.f32.mrb[0].mxu1 }
 0x157   : > { %v2235_v27 = vpop.f32.mrb[1].mxu1  ;;  %v1679_v46 = vadd.f32 %v2199_v40, %v2098_v15 }
 0x158   : > { %v2236_v25 = vadd.f32 %v2235_v27, %v2234_v42  ;;  %v2237_v63 = vpop.f32.mrb[2].mxu1 }
 0x159   : > { %v2238_v45 = vpop.f32.mrb[3].mxu1 }
 0x15a   : > { %v1741_v12 = vadd.f32 %v2236_v25, %v1676_v48  ;;  %v2239_v16 = vadd.f32 %v2238_v45, %v2237_v63 }
 0x15c   : > { %v1744_v17 = vadd.f32 %v2239_v16, %v1679_v46  ;;  %v2200_v18 = vpop.f32.mrb[4].mxu0 }
 0x15d   : > { %v2201_v49 = vpop.f32.mrb[5].mxu0 }
 0x15e   : > { %v2202_v52 = vadd.f32 %v2201_v49, %v2200_v18  ;;  %v2203_v30 = vpop.f32.mrb[6].mxu0 }
 0x15f   : > { %v2204_v4 = vpop.f32.mrb[7].mxu0 }
 0x160   : > { %v2205_v23 = vadd.f32 %v2204_v4, %v2203_v30  ;;  %v1684_v19 = vadd.f32 %v2202_v52, %v2098_v15 }
 0x162   : > { %v1687_v39 = vadd.f32 %v2205_v23, %v2098_v15 }
 0x168   : > { %v2240_v22 = vpop.f32.mrb[4].mxu1 }
 0x169   : > { %v2241_v34 = vpop.f32.mrb[5].mxu1 }
 0x16a   : > { %v2242_v20 = vadd.f32 %v2241_v34, %v2240_v22  ;;  %v2243_v6 = vpop.f32.mrb[6].mxu1 }
 0x16b   : > { %v2244_v54 = vpop.f32.mrb[7].mxu1 }
 0x16c   : > { %v1749_v61 = vadd.f32 %v2242_v20, %v1684_v19  ;;  %v2245_v50 = vadd.f32 %v2244_v54, %v2243_v6 }
 0x16e   : > { %v1752_v38 = vadd.f32 %v2245_v50, %v1687_v39 }
 0x170   : > { %v2206_v11 = vpop.f32.mrb[8].mxu0 }
 0x171   : > { %v2207_v58 = vpop.f32.mrb[9].mxu0 }
 0x172   : > { %v2208_v56 = vadd.f32 %v2207_v58, %v2206_v11  ;;  %v2209_v59 = vpop.f32.mrb[10].mxu0 }
 0x173   : > { %v2210_v32 = vpop.f32.mrb[11].mxu0  ;;  %v2246_v35 = vpop.f32.mrb[8].mxu1 }
 0x174   : > { %v1692_v47 = vadd.f32 %v2208_v56, %v2098_v15  ;;  %v2211_v36 = vadd.f32 %v2210_v32, %v2209_v59  ;;  %v2247_v51 = vpop.f32.mrb[9].mxu1 }
 0x175   : > { %v2248_v1 = vadd.f32 %v2247_v51, %v2246_v35  ;;  %v2249_v0 = vpop.f32.mrb[10].mxu1 }
 0x176   : > { %v1695_v33 = vadd.f32 %v2211_v36, %v2098_v15  ;;  %v2250_v28 = vpop.f32.mrb[11].mxu1 }
 0x177   : > { %v1757_v29 = vadd.f32 %v2248_v1, %v1692_v47  ;;  %v2251_v41 = vadd.f32 %v2250_v28, %v2249_v0 }
 0x178   : > { %v2212_v43 = vpop.f32.mrb[12].mxu0 }
 0x179   : > { %v2213_v14 = vpop.f32.mrb[13].mxu0  ;;  %v1760_v57 = vadd.f32 %v2251_v41, %v1695_v33 }
 0x17a   : > { %v2214_v53 = vadd.f32 %v2213_v14, %v2212_v43  ;;  %v2215_v10 = vpop.f32.mrb[14].mxu0 }
 0x17b   : > { %v2216_v37 = vpop.f32.mrb[15].mxu0 }
 0x17c   : > { %v2217_v21 = vadd.f32 %v2216_v37, %v2215_v10  ;;  %v2252_v9 = vpop.f32.mrb[12].mxu1  ;;  %v1700_v3 = vadd.f32 %v2214_v53, %v2098_v15 }
 0x17d   : > { %v2253_v26 = vpop.f32.mrb[13].mxu1 }
 0x17e   : > { %v2254_v13 = vadd.f32 %v2253_v26, %v2252_v9  ;;  %v2255_v2 = vpop.f32.mrb[14].mxu1  ;;  %v1703_v8 = vadd.f32 %v2217_v21, %v2098_v15 }
 0x17f   : > { %v2256_v44 = vpop.f32.mrb[15].mxu1 }
 0x180   : > { %v1765_v31 = vadd.f32 %v2254_v13, %v1700_v3  ;;  %v2257_v5 = vadd.f32 %v2256_v44, %v2255_v2 }
 0x182   : > { %v1768_v60 = vadd.f32 %v2257_v5, %v1703_v8 }
 0x186   : > { %v2314_v24 = vpop.f32.mrb[16].mxu1 }
 0x187   : > { %v2315_v55 = vpop.f32.mrb[17].mxu1 }
 0x188   : > { %v2274_v7 = vpop.f32.mrb[16].mxu0  ;;  %v2316_v40 = vadd.f32 %v2315_v55, %v2314_v24  ;;  %v2317_v42 = vpop.f32.mrb[18].mxu1 }
 0x189   : > { %v2275_v62 = vpop.f32.mrb[17].mxu0  ;;  %v2318_v25 = vpop.f32.mrb[19].mxu1 }
 0x18a   : > { %v2276_v48 = vadd.f32 %v2275_v62, %v2274_v7  ;;  %v2277_v27 = vpop.f32.mrb[18].mxu0  ;;  %v2319_v46 = vadd.f32 %v2318_v25, %v2317_v42 }
 0x18b   : > { %v2278_v63 = vpop.f32.mrb[19].mxu0 }
 0x18c   : > { %v1806_v45 = vadd.f32 %v2276_v48, %v1741_v12  ;;  %v2279_v16 = vadd.f32 %v2278_v63, %v2277_v27 }
 0x18e   : > { %v1809_v18 = vadd.f32 %v2279_v16, %v1744_v17  ;;  %v1871_v49 = vadd.f32 %v2316_v40, %v1806_v45 }
 0x190   : > { %v3357_v15 = vadd.f32 %v2319_v46, %v1809_v18  ;;  %v2320_v52 = vpop.f32.mrb[20].mxu1 }
 0x191   : > { %v2321_v4 = vpop.f32.mrb[21].mxu1 }
 0x192   : > { %v2280_v30 = vpop.f32.mrb[20].mxu0  ;;  %v2322_v22 = vadd.f32 %v2321_v4, %v2320_v52  ;;  %v2323_v19 = vpop.f32.mrb[22].mxu1 }
 0x193   : > { %v2281_v23 = vpop.f32.mrb[21].mxu0  ;;  %v2324_v6 = vpop.f32.mrb[23].mxu1 }
 0x194   : > { %v2282_v34 = vadd.f32 %v2281_v23, %v2280_v30  ;;  %v2283_v20 = vpop.f32.mrb[22].mxu0  ;;  %v2325_v54 = vadd.f32 %v2324_v6, %v2323_v19 }
 0x195   : > { %v2284_v39 = vpop.f32.mrb[23].mxu0 }
 0x196   : > { %v1814_v50 = vadd.f32 %v2282_v34, %v1749_v61  ;;  %v2285_v11 = vadd.f32 %v2284_v39, %v2283_v20 }
 0x198   : > { %v1817_v58 = vadd.f32 %v2285_v11, %v1752_v38  ;;  %v1879_v12 = vadd.f32 %v2322_v22, %v1814_v50 }
 0x19a   : > { %v1882_v56 = vadd.f32 %v2325_v54, %v1817_v58 }
 0x19b   : > { %v2326_v17 = vpop.f32.mrb[24].mxu1 }
 0x19c   : > { %v2286_v59 = vpop.f32.mrb[24].mxu0  ;;  %v2327_v32 = vpop.f32.mrb[25].mxu1 }
 0x19d   : > { %v2287_v35 = vpop.f32.mrb[25].mxu0  ;;  %v2328_v47 = vadd.f32 %v2327_v32, %v2326_v17  ;;  %v2329_v36 = vpop.f32.mrb[26].mxu1 }
 0x19e   : > { %v2288_v51 = vadd.f32 %v2287_v35, %v2286_v59  ;;  %v2289_v1 = vpop.f32.mrb[26].mxu0  ;;  %v2330_v0 = vpop.f32.mrb[27].mxu1 }
 0x19f   : > { %v2290_v33 = vpop.f32.mrb[27].mxu0  ;;  %v2331_v28 = vadd.f32 %v2330_v0, %v2329_v36 }
 0x1a0   : > { %v1822_v41 = vadd.f32 %v2288_v51, %v1757_v29  ;;  %v2291_v43 = vadd.f32 %v2290_v33, %v2289_v1 }
 0x1a2   : > { %v1825_v14 = vadd.f32 %v2291_v43, %v1760_v57  ;;  %v1887_v53 = vadd.f32 %v2328_v47, %v1822_v41 }
 0x1a4   : > { %v2292_v61 = vpop.f32.mrb[28].mxu0  ;;  %v1890_v10 = vadd.f32 %v2331_v28, %v1825_v14 }
 0x1a5   : > { %v2332_v38 = vpop.f32.mrb[28].mxu1  ;;  %v2293_v37 = vpop.f32.mrb[29].mxu0 }
 0x1a6   : > { %v2294_v21 = vadd.f32 %v2293_v37, %v2292_v61  ;;  %v2333_v9 = vpop.f32.mrb[29].mxu1  ;;  %v2295_v3 = vpop.f32.mrb[30].mxu0 }
 0x1a7   : > { %v2334_v26 = vadd.f32 %v2333_v9, %v2332_v38  ;;  %v2335_v13 = vpop.f32.mrb[30].mxu1  ;;  %v2296_v2 = vpop.f32.mrb[31].mxu0 }
 0x1a8   : > { %v1830_v8 = vadd.f32 %v2294_v21, %v1765_v31  ;;  %v2297_v44 = vadd.f32 %v2296_v2, %v2295_v3  ;;  %v2336_v5 = vpop.f32.mrb[31].mxu1 }
 0x1a9   : > { %v2337_v24 = vadd.f32 %v2336_v5, %v2335_v13 }
 0x1aa   : > { %v1833_v29 = vadd.f32 %v2297_v44, %v1768_v60  ;;  %v1895_v7 = vadd.f32 %v2334_v26, %v1830_v8 }
 0x1ac   : > { %v1898_v57 = vadd.f32 %v2337_v24, %v1833_v29 }
 0x1ae   : > { %v2368_v55 = vpop.f32.mrb[32].mxu0 }
 0x1af   : > { %v1944_v62 = vadd.f32 %v2368_v55, %v1879_v12  ;;  %v2372_v40 = vpop.f32.mrb[32].mxu1  ;;  %v1935_v42 = vpop.f32.mrb[33].mxu0 }
 0x1b0   : > { %v1960_v48 = vadd.f32 %v2372_v40, %v1895_v7  ;;  %v1936_v27 = vadd.f32 %v1935_v42, %v1871_v49  ;;  %v1951_v25 = vpop.f32.mrb[33].mxu1  ;;  %v2369_v63 = vpop.f32.mrb[34].mxu0 }
 0x1b1   : > { %1968 = vst [vmem:[%s203_s4 + $0x10] sm:$0xff] %v1944_v62  ;;  %v1952_v31 = vadd.f32 %v1951_v25, %v1887_v53  ;;  %v1947_v60 = vadd.f32 %v2369_v63, %v1882_v56  ;;  %v2373_v46 = vpop.f32.mrb[34].mxu1  ;;  %v1938_v45 = vpop.f32.mrb[35].mxu0 }
 0x1b2   : > { %1972 = vst [vmem:[%s203_s4 + $0x30] sm:$0xff] %v1960_v48  ;;  %1966 = vst [vmem:[%s203_s4] sm:$0xff] %v1936_v27  ;;  %v1963_v16 = vadd.f32 %v2373_v46, %v1898_v57  ;;  %v1939_v18 = vadd.f32 %v1938_v45, %v3357_v15  ;;  %v1954_v52 = vpop.f32.mrb[35].mxu1 }
 0x1b3   : > { %1970 = vst [vmem:[%s203_s4 + $0x20] sm:$0xff] %v1952_v31  ;;  %1969 = vst [vmem:[%s203_s4 + $0x18] sm:$0xff] %v1947_v60  ;;  %v1955_v49 = vadd.f32 %v1954_v52, %v1890_v10 }
 0x1b4   : > { %1973 = vst [vmem:[%s203_s4 + $0x38] sm:$0xff] %v1963_v16  ;;  %1967 = vst [vmem:[%s203_s4 + $0x8] sm:$0xff] %v1939_v18 }
 0x1b5   : > { %1971 = vst [vmem:[%s203_s4 + $0x28] sm:$0xff] %v1955_v49 }
 0x1b6   : > { %2601 = shalt.err (!%p2598_p7)
}
 0x1b7   : > { %s2602_s30 = scalar_lea.hbm %s3368_s10, 1024  ;;  %s2606_s8 = scalar_lea.hbm %s3415_s3, 2048 }
 0x1b8   : > { %p2603_p9 = scmp.ne.s32.totalorder %s3368_s10, %s2602_s30  ;;  %p2607_p5 = scmp.lt.u32.totalorder %s3368_s10, %s3415_s3 }
 0x1b9   : > { %p2608_p11 = scmp.lt.u32.totalorder %s2606_s8, %s2602_s30  ;;  %p2610_p4 = scmp.lt.u32.totalorder %s2602_s30, %s3368_s10 }
 0x1ba   : > { %p2604_p2 = pnand %p2603_p9, %p2781_p12 }
 0x1bb   : > { %p2609_p1 = por %p2608_p11, %p2607_p5 }
 0x1bc   : > { %p2605_p0 = pneg %p2604_p2 }
 0x1bd   : > { %p2611_p6 = por %p2610_p4, %p2609_p1 }
 0x1bf   : > { %p2612_p8 = pnand %p2611_p6, %p2605_p0 }
 0x1c1   : > { %2615 = shalt.err (!%p2612_p8)
}
 0x1c2   : > { %s2668_s20 = smov 128   ;;  %s2669_s4 = smov 8  }
 0x1c3   : > { %2396 = dma.vmem_to_hbm [thread:$0]  (%p2781_p12), %s3362_s25, 1024, %s3368_s10, %s1975_s11, %s2668_s20, %s2668_s20, %s2669_s4  }
 0x1c4 PF: > { %s2003_s26 = sand.u32 1, %s2646_s12   ;;  %p3440_p10 = scmp.ne.s32.totalorder %s3420_s19, 0 }
 0x1c5   : > { %p3441_p13 = scmp.ge.s32.totalorder %s2658_s15, 2  ;;  %s2004_s16 = scalar_lea.sflag [#allocation4], %s2003_s26 }
 0x1c7   : > { %p2407_p3 = pnand %p3441_p13, %p3440_p10 }
 0x1c9   : > { %2641 = dma.done.wait (!%p2407_p3), %s2004_s16, 1024  }
 0x1ca   : > { %2643 = vsyncadd (!%p2407_p3), %s2004_s16, 4294966272  ;;  %p17_p7 = scmp.ge.s32.totalorder %s2746_s24, 4   ;;  %s3442_s12 = smov %s2650_s13 }
 0x1cb   : > { %s3443_s13 = smov %s2654_s14  ;;  %s3444_s14 = smov %s2777_s17 }
 0x1cc   : > { %s3445_s15 = smov %s2746_s24  ;;  %19 = sbr.rel (!%p17_p7) target bundleno = 6 (0x6), region = 81 }
 0x1d3   :  { %2009 = vsyncpa [#allocation3], 1 }
 0x1d4   :  { %2011 = vsyncpa [#allocation3 + $0x1], 1 }
 0x1d5   :  { %2012 = vsyncpa [#allocation6], 1 }
 0x1d6   :  { %2013 = vsyncpa [#allocation4], 1 }
 0x1d7   :  { %2015 = vsyncpa [#allocation4 + $0x1], 1 }

</bundles_post_ra>
